<compile_context>
chip_gen: v7x
topology: tpu7x:2x2x1
jax: 0.10.0
libtpu: 0.0.40
codegen_flags: <defaults>
</compile_context>

<pallas_src>
import functools

import jax
import jax.numpy as jnp
from jax import lax
from jax.experimental import pallas as pl
from jax.experimental.pallas import tpu as pltpu

NEG_SLOPE = 0.01  # nn.LeakyReLU default negative_slope


def _bilinear_matrix(n_in, n_out):
    """(n_out, n_in) matrix reproducing F.interpolate(mode='bilinear', align_corners=True)."""
    if n_in == 1:
        return jnp.ones((n_out, 1), jnp.float32)
    pos = jnp.arange(n_out, dtype=jnp.float32) * (n_in - 1) / (n_out - 1)
    i0 = jnp.clip(jnp.floor(pos).astype(jnp.int32), 0, n_in - 2)
    frac = pos - i0.astype(jnp.float32)
    rows = jnp.arange(n_out)
    m = jnp.zeros((n_out, n_in), jnp.float32)
    m = m.at[rows, i0].add(1.0 - frac)
    m = m.at[rows, i0 + 1].add(frac)
    return m


def _leaky(x):
    return jnp.where(x > 0, x, NEG_SLOPE * x)


def _pick_channel_tile(C, H, target_rows=256):
    """Largest channel tile C_T (C % C_T == 0) whose x-block height C_T*H stays near
    `target_rows` sublanes while keeping the (8,128) block rule satisfied."""
    valid = [t for t in range(1, C + 1)
             if C % t == 0 and (t == C or (t * H) % 8 == 0)]
    within = [t for t in valid if t * H <= target_rows]
    return max(within) if within else min(valid)


def _ds_upconv_kernel(x_ref, wx3_ref, wyd_ref, dwb_ref, pww_ref, pwb_ref, o_ref,
                      *, H, C_T, Cout, n_ct):
    ct = pl.program_id(1)
    base = ct * C_T                      # first channel of this tile (SMEM parameter lookups)

    # ---- x-direction upsample: one batched MXU matmul per depthwise column shift ----
    # (channel tile folded into M; zero padding and the dx shift are baked into wx3)
    xw0 = jnp.dot(x_ref[0], wx3_ref[0], preferred_element_type=jnp.float32)   # (C_T*H, W2)
    xw1 = jnp.dot(x_ref[0], wx3_ref[1], preferred_element_type=jnp.float32)
    xw2 = jnp.dot(x_ref[0], wx3_ref[2], preferred_element_type=jnp.float32)

    # ---- y-direction upsample + depthwise 3x3 + bias + LeakyReLU: one matmul per channel ----
    d_planes = []
    for j in range(C_T):                 # static unroll over the channel tile
        r0, r1 = j * H, (j + 1) * H      # tile-aligned value slices (H multiple of 8)
        rhs = jnp.concatenate([xw0[r0:r1], xw1[r0:r1], xw2[r0:r1]], axis=0)   # (3H, W2)
        dw = jnp.dot(wyd_ref[j], rhs, preferred_element_type=jnp.float32)     # (H2, W2)
        d_planes.append(_leaky(dw + dwb_ref[base + j]))

    # ---- pointwise 1x1: exact contraction over this tile's channels ----
    ps = []
    for o in range(Cout):
        p = d_planes[0] * pww_ref[base, o]
        for j in range(1, C_T):
            p = p + d_planes[j] * pww_ref[base + j, o]
        ps.append(p)

    if n_ct == 1:
        # single channel tile: write the final activated output directly (no init pass)
        for o in range(Cout):
            o_ref[0, o] = _leaky(ps[o] + pwb_ref[o])
    else:
        @pl.when(ct == 0)
        def _init():
            o_ref[...] = jnp.zeros_like(o_ref)

        is_last = ct == n_ct - 1

        @pl.when(is_last)                # bias + LeakyReLU fused into the last accumulation
        def _acc_last():
            for o in range(Cout):
                o_ref[0, o] = _leaky(o_ref[0, o] + ps[o] + pwb_ref[o])

        @pl.when(jnp.logical_not(is_last))
        def _acc():
            for o in range(Cout):
                o_ref[0, o] = o_ref[0, o] + ps[o]


def ds_upconv_bilinear(x, dw_w, dw_b, pw_w, pw_b):
    """x: (N,C,H,W) f32; dw_w: (C,1,3,3); dw_b: (C,); pw_w: (Cout,C,1,1); pw_b: (Cout,)."""
    N, C, H, W = x.shape
    Cout = pw_w.shape[0]
    H2, W2 = 2 * H, 2 * W
    C_T = _pick_channel_tile(C, H)
    n_ct = C // C_T

    # ---- zero-cost layout + small parameter packing (host-side JAX glue) ----
    x_p = x.reshape(N, C * H, W)                                   # NCHW-native, no transpose

    wy = _bilinear_matrix(H, H2)                                   # (H2, H)
    wx = _bilinear_matrix(W, W2)                                   # (W2, W)
    wy_ext = jnp.zeros((H2 + 2, H), jnp.float32).at[1:H2 + 1, :].set(wy)
    wx_ext = jnp.zeros((W, W2 + 2), jnp.float32).at[:, 1:W2 + 1].set(wx.T)

    # three column-shifted x-upsample matrices (dx shift + zero padding baked in)
    wx3 = jnp.stack([wx_ext[:, dx:dx + W2] for dx in range(3)], axis=0)        # (3, W, W2)
    # per-channel y-upsample matrices with the 3x3 taps folded in; K ordered (dx, h)
    wy_sh = jnp.stack([wy_ext[dy:dy + H2, :] for dy in range(3)], axis=0)      # (3, H2, H)
    w9 = dw_w.reshape(C, 3, 3).astype(jnp.float32)                             # [c, dy, dx]
    wyd = jnp.einsum('cyx,yph->cxph', w9, wy_sh)                               # (C, 3, H2, H)
    wyd_cat = wyd.transpose(0, 2, 1, 3).reshape(C, H2, 3 * H)                  # (C, H2, 3H)

    dwb = dw_b.astype(jnp.float32)                                 # (C,)       SMEM scalars
    pww = pw_w[:, :, 0, 0].T.astype(jnp.float32)                   # (C, Cout)  SMEM scalars
    pwb = pw_b.astype(jnp.float32)                                 # (Cout,)    SMEM scalars

    flops = N * (6 * C * H * W * W2              # 3 column-shifted x-upsample matmuls
                 + 6 * C * H2 * H * W2           # per-channel y-stage matmuls (K = 3H)
                 + 2 * C * Cout * H2 * W2)       # pointwise 1x1
    bytes_accessed = 4 * (x.size + N * Cout * H2 * W2 + wx3.size + wyd_cat.size
                          + C + C * Cout + Cout)

    kernel = functools.partial(_ds_upconv_kernel, H=H, C_T=C_T, Cout=Cout, n_ct=n_ct)
    smem = pltpu.MemorySpace.SMEM
    out = pl.pallas_call(
        kernel,
        out_shape=jax.ShapeDtypeStruct((N, Cout, H2, W2), jnp.float32),
        grid_spec=pltpu.PrefetchScalarGridSpec(
            num_scalar_prefetch=0,
            grid=(N, n_ct),
            in_specs=[
                pl.BlockSpec((1, C_T * H, W), lambda n, ct: (n, ct, 0)),       # x tile
                pl.BlockSpec((3, W, W2), lambda n, ct: (0, 0, 0)),             # wx3 (resident)
                pl.BlockSpec((C_T, H2, 3 * H), lambda n, ct: (ct, 0, 0)),      # folded wy + taps
                pl.BlockSpec(memory_space=smem),                               # dw bias (C,)
                pl.BlockSpec(memory_space=smem),                               # pw weight (C,Cout)
                pl.BlockSpec(memory_space=smem),                               # pw bias (Cout,)
            ],
            out_specs=pl.BlockSpec((1, Cout, H2, W2), lambda n, ct: (n, 0, 0, 0)),
        ),
        compiler_params=pltpu.CompilerParams(
            dimension_semantics=("parallel", "arbitrary"),
            vmem_limit_bytes=48 * 1024 * 1024),
        cost_estimate=pl.CostEstimate(flops=flops, transcendentals=0,
                                      bytes_accessed=bytes_accessed),
    )(x_p, wx3, wyd_cat, dwb, pww, pwb)
    return out


def _reference(x, dw_w, dw_b, pw_w, pw_b):
    """Pure-JAX reference of the PyTorch forward pass (NCHW)."""
    N, C, H, W = x.shape
    wy = _bilinear_matrix(H, 2 * H)
    wx = _bilinear_matrix(W, 2 * W)
    up = jnp.einsum('ph,nchw->ncpw', wy, x)
    up = jnp.einsum('qw,ncpw->ncpq', wx, up)
    dw = lax.conv_general_dilated(
        up, dw_w, window_strides=(1, 1), padding=((1, 1), (1, 1)),
        dimension_numbers=('NCHW', 'OIHW', 'NCHW'), feature_group_count=C)
    dw = _leaky(dw + dw_b[None, :, None, None])
    pw = jnp.einsum('nchw,oc->nohw', dw, pw_w[:, :, 0, 0])
    pw = _leaky(pw + pw_b[None, :, None, None])
    return pw


def _run_check(key, N, Cin, Cout, H, W):
    kx, k1, k2, k3, k4 = jax.random.split(key, 5)
    x = jax.random.normal(kx, (N, Cin, H, W), jnp.float32)
    dw_w = 0.2 * jax.random.normal(k1, (Cin, 1, 3, 3), jnp.float32)     # depthwise weight
    dw_b = 0.1 * jax.random.normal(k2, (Cin,), jnp.float32)             # depthwise bias
    pw_w = 0.2 * jax.random.normal(k3, (Cout, Cin, 1, 1), jnp.float32)  # pointwise weight
    pw_b = 0.1 * jax.random.normal(k4, (Cout,), jnp.float32)            # pointwise bias

    out = jax.block_until_ready(jax.jit(ds_upconv_bilinear)(x, dw_w, dw_b, pw_w, pw_b))
    ref = jax.block_until_ready(_reference(x, dw_w, dw_b, pw_w, pw_b))

    assert out.shape == (N, Cout, 2 * H, 2 * W), out.shape
    assert jnp.allclose(out, ref, atol=1e-4, rtol=1e-4), float(jnp.max(jnp.abs(out - ref)))


if __name__ == "__main__":
    # primary small test (single channel tile, exercises the fused direct-store path)
    _run_check(jax.random.PRNGKey(0), N=2, Cin=4, Cout=8, H=16, W=16)
    # multi-channel-tile path (exercises the resident accumulator + fused finalize)
    _run_check(jax.random.PRNGKey(0), N=1, Cin=32, Cout=8, H=16, W=16)
    print("KERNEL_OK")
</pallas_src>

<mosaic_0001>
module attributes {stable_mosaic.version = 11 : i64} {
  func.func private @main(%arg0: i32) attributes {dimension_semantics = [#tpu.dimension_semantics<core_parallel>], iteration_bounds = array<i64: 2>, tpu.core_type = #tpu.core_type<sc_scalar_subcore>, window_params = []} {
    return
  }
}

module attributes {stable_mosaic.version = 11 : i64} {
  func.func private @main(%arg0: i32) attributes {dimension_semantics = [#tpu.dimension_semantics<core_parallel>], iteration_bounds = array<i64: 2>, tpu.core_type = #tpu.core_type<sc_scalar_subcore>, window_params = []} {
    return
  }
}

module attributes {stable_mosaic.version = 11 : i64} {
  func.func @_ds_upconv_kernel(%arg0: i32, %arg1: i32, %arg2: memref<1x64x16xf32, #tpu.memory_space<vmem>>, %arg3: memref<3x16x32xf32, #tpu.memory_space<vmem>>, %arg4: memref<4x32x48xf32, #tpu.memory_space<vmem>>, %arg5: memref<4xf32, #tpu.memory_space<smem>>, %arg6: memref<4x8xf32, #tpu.memory_space<smem>>, %arg7: memref<8xf32, #tpu.memory_space<smem>>, %arg8: memref<1x8x32x32xf32, #tpu.memory_space<vmem>>) attributes {dimension_semantics = [#tpu.dimension_semantics<parallel>, #tpu.dimension_semantics<arbitrary>], iteration_bounds = array<i64: 2, 1>, scalar_prefetch = 0 : i64, scratch_operands = 0 : i64, tpu.core_type = #tpu.core_type<tc>, window_params = [{transform_indices = @transform_0, window_bounds = array<i64: 1, 64, 16>}, {pipeline_mode = #tpu.pipeline_mode<synchronous>, transform_indices = @transform_1, window_bounds = array<i64: 3, 16, 32>}, {transform_indices = @transform_2, window_bounds = array<i64: 4, 32, 48>}, {transform_indices = @transform_3, window_bounds = array<i64: 4>}, {transform_indices = @transform_4, window_bounds = array<i64: 4, 8>}, {transform_indices = @transform_5, window_bounds = array<i64: 8>}, {transform_indices = @transform_6, window_bounds = array<i64: 1, 8, 32, 32>}]} {
    %c4_i32 = arith.constant 4 : i32
    %0 = arith.muli %arg1, %c4_i32 : i32
    %c0 = arith.constant 0 : index
    %c0_0 = arith.constant 0 : index
    %c0_1 = arith.constant 0 : index
    %1 = vector.load %arg2[%c0, %c0_0, %c0_1] : memref<1x64x16xf32, #tpu.memory_space<vmem>>, vector<1x64x16xf32>
    %2 = vector.shape_cast %1 : vector<1x64x16xf32> to vector<64x16xf32>
    %c0_2 = arith.constant 0 : index
    %c0_3 = arith.constant 0 : index
    %c0_4 = arith.constant 0 : index
    %3 = vector.load %arg3[%c0_2, %c0_3, %c0_4] : memref<3x16x32xf32, #tpu.memory_space<vmem>>, vector<1x16x32xf32>
    %4 = vector.shape_cast %3 : vector<1x16x32xf32> to vector<16x32xf32>
    %cst = arith.constant dense<0.000000e+00> : vector<64x32xf32>
    %5 = tpu.matmul %2, %4, %cst {dimension_numbers = #tpu.dot_dimension_numbers<[1], [0], [0], [1], [0, 0, 1, 1], [], []>} : vector<64x16xf32>, vector<16x32xf32>, vector<64x32xf32> -> vector<64x32xf32>
    %c0_5 = arith.constant 0 : index
    %c0_6 = arith.constant 0 : index
    %c0_7 = arith.constant 0 : index
    %6 = vector.load %arg2[%c0_5, %c0_6, %c0_7] : memref<1x64x16xf32, #tpu.memory_space<vmem>>, vector<1x64x16xf32>
    %7 = vector.shape_cast %6 : vector<1x64x16xf32> to vector<64x16xf32>
    %c1 = arith.constant 1 : index
    %c0_8 = arith.constant 0 : index
    %c0_9 = arith.constant 0 : index
    %8 = vector.load %arg3[%c1, %c0_8, %c0_9] : memref<3x16x32xf32, #tpu.memory_space<vmem>>, vector<1x16x32xf32>
    %9 = vector.shape_cast %8 : vector<1x16x32xf32> to vector<16x32xf32>
    %cst_10 = arith.constant dense<0.000000e+00> : vector<64x32xf32>
    %10 = tpu.matmul %7, %9, %cst_10 {dimension_numbers = #tpu.dot_dimension_numbers<[1], [0], [0], [1], [0, 0, 1, 1], [], []>} : vector<64x16xf32>, vector<16x32xf32>, vector<64x32xf32> -> vector<64x32xf32>
    %c0_11 = arith.constant 0 : index
    %c0_12 = arith.constant 0 : index
    %c0_13 = arith.constant 0 : index
    %11 = vector.load %arg2[%c0_11, %c0_12, %c0_13] : memref<1x64x16xf32, #tpu.memory_space<vmem>>, vector<1x64x16xf32>
    %12 = vector.shape_cast %11 : vector<1x64x16xf32> to vector<64x16xf32>
    %c2 = arith.constant 2 : index
    %c0_14 = arith.constant 0 : index
    %c0_15 = arith.constant 0 : index
    %13 = vector.load %arg3[%c2, %c0_14, %c0_15] : memref<3x16x32xf32, #tpu.memory_space<vmem>>, vector<1x16x32xf32>
    %14 = vector.shape_cast %13 : vector<1x16x32xf32> to vector<16x32xf32>
    %cst_16 = arith.constant dense<0.000000e+00> : vector<64x32xf32>
    %15 = tpu.matmul %12, %14, %cst_16 {dimension_numbers = #tpu.dot_dimension_numbers<[1], [0], [0], [1], [0, 0, 1, 1], [], []>} : vector<64x16xf32>, vector<16x32xf32>, vector<64x32xf32> -> vector<64x32xf32>
    %16 = vector.extract_strided_slice %5 {offsets = [0, 0], sizes = [16, 32], strides = [1, 1]} : vector<64x32xf32> to vector<16x32xf32>
    %17 = vector.extract_strided_slice %10 {offsets = [0, 0], sizes = [16, 32], strides = [1, 1]} : vector<64x32xf32> to vector<16x32xf32>
    %18 = vector.extract_strided_slice %15 {offsets = [0, 0], sizes = [16, 32], strides = [1, 1]} : vector<64x32xf32> to vector<16x32xf32>
    %19 = tpu.concatenate %16, %17, %18 in 0 : vector<16x32xf32>, vector<16x32xf32>, vector<16x32xf32> -> vector<48x32xf32>
    %c0_17 = arith.constant 0 : index
    %c0_18 = arith.constant 0 : index
    %c0_19 = arith.constant 0 : index
    %20 = vector.load %arg4[%c0_17, %c0_18, %c0_19] : memref<4x32x48xf32, #tpu.memory_space<vmem>>, vector<1x32x48xf32>
    %21 = vector.shape_cast %20 : vector<1x32x48xf32> to vector<32x48xf32>
    %cst_20 = arith.constant dense<0.000000e+00> : vector<32x32xf32>
    %22 = tpu.matmul %21, %19, %cst_20 {dimension_numbers = #tpu.dot_dimension_numbers<[1], [0], [0], [1], [0, 0, 1, 1], [], []>} : vector<32x48xf32>, vector<48x32xf32>, vector<32x32xf32> -> vector<32x32xf32>
    %c0_i32 = arith.constant 0 : i32
    %23 = arith.addi %0, %c0_i32 : i32
    %24 = arith.index_cast %23 : i32 to index
    %25 = memref.load %arg5[%24] : memref<4xf32, #tpu.memory_space<smem>>
    %26 = vector.broadcast %25 : f32 to vector<32x32xf32>
    %27 = arith.addf %22, %26 : vector<32x32xf32>
    %cst_21 = arith.constant 0.000000e+00 : f32
    %28 = vector.broadcast %cst_21 : f32 to vector<32x32xf32>
    %29 = arith.cmpf ogt, %27, %28 : vector<32x32xf32>
    %cst_22 = arith.constant 0.00999999977 : f32
    %30 = vector.broadcast %cst_22 : f32 to vector<32x32xf32>
    %31 = arith.mulf %30, %27 : vector<32x32xf32>
    %32 = arith.select %29, %27, %31 : vector<32x32xi1>, vector<32x32xf32>
    %33 = vector.extract_strided_slice %5 {offsets = [16, 0], sizes = [16, 32], strides = [1, 1]} : vector<64x32xf32> to vector<16x32xf32>
    %34 = vector.extract_strided_slice %10 {offsets = [16, 0], sizes = [16, 32], strides = [1, 1]} : vector<64x32xf32> to vector<16x32xf32>
    %35 = vector.extract_strided_slice %15 {offsets = [16, 0], sizes = [16, 32], strides = [1, 1]} : vector<64x32xf32> to vector<16x32xf32>
    %36 = tpu.concatenate %33, %34, %35 in 0 : vector<16x32xf32>, vector<16x32xf32>, vector<16x32xf32> -> vector<48x32xf32>
    %c1_23 = arith.constant 1 : index
    %c0_24 = arith.constant 0 : index
    %c0_25 = arith.constant 0 : index
    %37 = vector.load %arg4[%c1_23, %c0_24, %c0_25] : memref<4x32x48xf32, #tpu.memory_space<vmem>>, vector<1x32x48xf32>
    %38 = vector.shape_cast %37 : vector<1x32x48xf32> to vector<32x48xf32>
    %cst_26 = arith.constant dense<0.000000e+00> : vector<32x32xf32>
    %39 = tpu.matmul %38, %36, %cst_26 {dimension_numbers = #tpu.dot_dimension_numbers<[1], [0], [0], [1], [0, 0, 1, 1], [], []>} : vector<32x48xf32>, vector<48x32xf32>, vector<32x32xf32> -> vector<32x32xf32>
    %c1_i32 = arith.constant 1 : i32
    %40 = arith.addi %0, %c1_i32 : i32
    %41 = arith.index_cast %40 : i32 to index
    %42 = memref.load %arg5[%41] : memref<4xf32, #tpu.memory_space<smem>>
    %43 = vector.broadcast %42 : f32 to vector<32x32xf32>
    %44 = arith.addf %39, %43 : vector<32x32xf32>
    %cst_27 = arith.constant 0.000000e+00 : f32
    %45 = vector.broadcast %cst_27 : f32 to vector<32x32xf32>
    %46 = arith.cmpf ogt, %44, %45 : vector<32x32xf32>
    %cst_28 = arith.constant 0.00999999977 : f32
    %47 = vector.broadcast %cst_28 : f32 to vector<32x32xf32>
    %48 = arith.mulf %47, %44 : vector<32x32xf32>
    %49 = arith.select %46, %44, %48 : vector<32x32xi1>, vector<32x32xf32>
    %50 = vector.extract_strided_slice %5 {offsets = [32, 0], sizes = [16, 32], strides = [1, 1]} : vector<64x32xf32> to vector<16x32xf32>
    %51 = vector.extract_strided_slice %10 {offsets = [32, 0], sizes = [16, 32], strides = [1, 1]} : vector<64x32xf32> to vector<16x32xf32>
    %52 = vector.extract_strided_slice %15 {offsets = [32, 0], sizes = [16, 32], strides = [1, 1]} : vector<64x32xf32> to vector<16x32xf32>
    %53 = tpu.concatenate %50, %51, %52 in 0 : vector<16x32xf32>, vector<16x32xf32>, vector<16x32xf32> -> vector<48x32xf32>
    %c2_29 = arith.constant 2 : index
    %c0_30 = arith.constant 0 : index
    %c0_31 = arith.constant 0 : index
    %54 = vector.load %arg4[%c2_29, %c0_30, %c0_31] : memref<4x32x48xf32, #tpu.memory_space<vmem>>, vector<1x32x48xf32>
    %55 = vector.shape_cast %54 : vector<1x32x48xf32> to vector<32x48xf32>
    %cst_32 = arith.constant dense<0.000000e+00> : vector<32x32xf32>
    %56 = tpu.matmul %55, %53, %cst_32 {dimension_numbers = #tpu.dot_dimension_numbers<[1], [0], [0], [1], [0, 0, 1, 1], [], []>} : vector<32x48xf32>, vector<48x32xf32>, vector<32x32xf32> -> vector<32x32xf32>
    %c2_i32 = arith.constant 2 : i32
    %57 = arith.addi %0, %c2_i32 : i32
    %58 = arith.index_cast %57 : i32 to index
    %59 = memref.load %arg5[%58] : memref<4xf32, #tpu.memory_space<smem>>
    %60 = vector.broadcast %59 : f32 to vector<32x32xf32>
    %61 = arith.addf %56, %60 : vector<32x32xf32>
    %cst_33 = arith.constant 0.000000e+00 : f32
    %62 = vector.broadcast %cst_33 : f32 to vector<32x32xf32>
    %63 = arith.cmpf ogt, %61, %62 : vector<32x32xf32>
    %cst_34 = arith.constant 0.00999999977 : f32
    %64 = vector.broadcast %cst_34 : f32 to vector<32x32xf32>
    %65 = arith.mulf %64, %61 : vector<32x32xf32>
    %66 = arith.select %63, %61, %65 : vector<32x32xi1>, vector<32x32xf32>
    %67 = vector.extract_strided_slice %5 {offsets = [48, 0], sizes = [16, 32], strides = [1, 1]} : vector<64x32xf32> to vector<16x32xf32>
    %68 = vector.extract_strided_slice %10 {offsets = [48, 0], sizes = [16, 32], strides = [1, 1]} : vector<64x32xf32> to vector<16x32xf32>
    %69 = vector.extract_strided_slice %15 {offsets = [48, 0], sizes = [16, 32], strides = [1, 1]} : vector<64x32xf32> to vector<16x32xf32>
    %70 = tpu.concatenate %67, %68, %69 in 0 : vector<16x32xf32>, vector<16x32xf32>, vector<16x32xf32> -> vector<48x32xf32>
    %c3 = arith.constant 3 : index
    %c0_35 = arith.constant 0 : index
    %c0_36 = arith.constant 0 : index
    %71 = vector.load %arg4[%c3, %c0_35, %c0_36] : memref<4x32x48xf32, #tpu.memory_space<vmem>>, vector<1x32x48xf32>
    %72 = vector.shape_cast %71 : vector<1x32x48xf32> to vector<32x48xf32>
    %cst_37 = arith.constant dense<0.000000e+00> : vector<32x32xf32>
    %73 = tpu.matmul %72, %70, %cst_37 {dimension_numbers = #tpu.dot_dimension_numbers<[1], [0], [0], [1], [0, 0, 1, 1], [], []>} : vector<32x48xf32>, vector<48x32xf32>, vector<32x32xf32> -> vector<32x32xf32>
    %c3_i32 = arith.constant 3 : i32
    %74 = arith.addi %0, %c3_i32 : i32
    %75 = arith.index_cast %74 : i32 to index
    %76 = memref.load %arg5[%75] : memref<4xf32, #tpu.memory_space<smem>>
    %77 = vector.broadcast %76 : f32 to vector<32x32xf32>
    %78 = arith.addf %73, %77 : vector<32x32xf32>
    %cst_38 = arith.constant 0.000000e+00 : f32
    %79 = vector.broadcast %cst_38 : f32 to vector<32x32xf32>
    %80 = arith.cmpf ogt, %78, %79 : vector<32x32xf32>
    %cst_39 = arith.constant 0.00999999977 : f32
    %81 = vector.broadcast %cst_39 : f32 to vector<32x32xf32>
    %82 = arith.mulf %81, %78 : vector<32x32xf32>
    %83 = arith.select %80, %78, %82 : vector<32x32xi1>, vector<32x32xf32>
    %84 = arith.index_cast %0 : i32 to index
    %c0_40 = arith.constant 0 : index
    %85 = memref.load %arg6[%84, %c0_40] : memref<4x8xf32, #tpu.memory_space<smem>>
    %86 = vector.broadcast %85 : f32 to vector<32x32xf32>
    %87 = arith.mulf %32, %86 : vector<32x32xf32>
    %c1_i32_41 = arith.constant 1 : i32
    %88 = arith.addi %0, %c1_i32_41 : i32
    %89 = arith.index_cast %88 : i32 to index
    %c0_42 = arith.constant 0 : index
    %90 = memref.load %arg6[%89, %c0_42] : memref<4x8xf32, #tpu.memory_space<smem>>
    %91 = vector.broadcast %90 : f32 to vector<32x32xf32>
    %92 = arith.mulf %49, %91 : vector<32x32xf32>
    %93 = arith.addf %87, %92 : vector<32x32xf32>
    %c2_i32_43 = arith.constant 2 : i32
    %94 = arith.addi %0, %c2_i32_43 : i32
    %95 = arith.index_cast %94 : i32 to index
    %c0_44 = arith.constant 0 : index
    %96 = memref.load %arg6[%95, %c0_44] : memref<4x8xf32, #tpu.memory_space<smem>>
    %97 = vector.broadcast %96 : f32 to vector<32x32xf32>
    %98 = arith.mulf %66, %97 : vector<32x32xf32>
    %99 = arith.addf %93, %98 : vector<32x32xf32>
    %c3_i32_45 = arith.constant 3 : i32
    %100 = arith.addi %0, %c3_i32_45 : i32
    %101 = arith.index_cast %100 : i32 to index
    %c0_46 = arith.constant 0 : index
    %102 = memref.load %arg6[%101, %c0_46] : memref<4x8xf32, #tpu.memory_space<smem>>
    %103 = vector.broadcast %102 : f32 to vector<32x32xf32>
    %104 = arith.mulf %83, %103 : vector<32x32xf32>
    %105 = arith.addf %99, %104 : vector<32x32xf32>
    %106 = arith.index_cast %0 : i32 to index
    %c1_47 = arith.constant 1 : index
    %107 = memref.load %arg6[%106, %c1_47] : memref<4x8xf32, #tpu.memory_space<smem>>
    %108 = vector.broadcast %107 : f32 to vector<32x32xf32>
    %109 = arith.mulf %32, %108 : vector<32x32xf32>
    %c1_i32_48 = arith.constant 1 : i32
    %110 = arith.addi %0, %c1_i32_48 : i32
    %111 = arith.index_cast %110 : i32 to index
    %c1_49 = arith.constant 1 : index
    %112 = memref.load %arg6[%111, %c1_49] : memref<4x8xf32, #tpu.memory_space<smem>>
    %113 = vector.broadcast %112 : f32 to vector<32x32xf32>
    %114 = arith.mulf %49, %113 : vector<32x32xf32>
    %115 = arith.addf %109, %114 : vector<32x32xf32>
    %c2_i32_50 = arith.constant 2 : i32
    %116 = arith.addi %0, %c2_i32_50 : i32
    %117 = arith.index_cast %116 : i32 to index
    %c1_51 = arith.constant 1 : index
    %118 = memref.load %arg6[%117, %c1_51] : memref<4x8xf32, #tpu.memory_space<smem>>
    %119 = vector.broadcast %118 : f32 to vector<32x32xf32>
    %120 = arith.mulf %66, %119 : vector<32x32xf32>
    %121 = arith.addf %115, %120 : vector<32x32xf32>
    %c3_i32_52 = arith.constant 3 : i32
    %122 = arith.addi %0, %c3_i32_52 : i32
    %123 = arith.index_cast %122 : i32 to index
    %c1_53 = arith.constant 1 : index
    %124 = memref.load %arg6[%123, %c1_53] : memref<4x8xf32, #tpu.memory_space<smem>>
    %125 = vector.broadcast %124 : f32 to vector<32x32xf32>
    %126 = arith.mulf %83, %125 : vector<32x32xf32>
    %127 = arith.addf %121, %126 : vector<32x32xf32>
    %128 = arith.index_cast %0 : i32 to index
    %c2_54 = arith.constant 2 : index
    %129 = memref.load %arg6[%128, %c2_54] : memref<4x8xf32, #tpu.memory_space<smem>>
    %130 = vector.broadcast %129 : f32 to vector<32x32xf32>
    %131 = arith.mulf %32, %130 : vector<32x32xf32>
    %c1_i32_55 = arith.constant 1 : i32
    %132 = arith.addi %0, %c1_i32_55 : i32
    %133 = arith.index_cast %132 : i32 to index
    %c2_56 = arith.constant 2 : index
    %134 = memref.load %arg6[%133, %c2_56] : memref<4x8xf32, #tpu.memory_space<smem>>
    %135 = vector.broadcast %134 : f32 to vector<32x32xf32>
    %136 = arith.mulf %49, %135 : vector<32x32xf32>
    %137 = arith.addf %131, %136 : vector<32x32xf32>
    %c2_i32_57 = arith.constant 2 : i32
    %138 = arith.addi %0, %c2_i32_57 : i32
    %139 = arith.index_cast %138 : i32 to index
    %c2_58 = arith.constant 2 : index
    %140 = memref.load %arg6[%139, %c2_58] : memref<4x8xf32, #tpu.memory_space<smem>>
    %141 = vector.broadcast %140 : f32 to vector<32x32xf32>
    %142 = arith.mulf %66, %141 : vector<32x32xf32>
    %143 = arith.addf %137, %142 : vector<32x32xf32>
    %c3_i32_59 = arith.constant 3 : i32
    %144 = arith.addi %0, %c3_i32_59 : i32
    %145 = arith.index_cast %144 : i32 to index
    %c2_60 = arith.constant 2 : index
    %146 = memref.load %arg6[%145, %c2_60] : memref<4x8xf32, #tpu.memory_space<smem>>
    %147 = vector.broadcast %146 : f32 to vector<32x32xf32>
    %148 = arith.mulf %83, %147 : vector<32x32xf32>
    %149 = arith.addf %143, %148 : vector<32x32xf32>
    %150 = arith.index_cast %0 : i32 to index
    %c3_61 = arith.constant 3 : index
    %151 = memref.load %arg6[%150, %c3_61] : memref<4x8xf32, #tpu.memory_space<smem>>
    %152 = vector.broadcast %151 : f32 to vector<32x32xf32>
    %153 = arith.mulf %32, %152 : vector<32x32xf32>
    %c1_i32_62 = arith.constant 1 : i32
    %154 = arith.addi %0, %c1_i32_62 : i32
    %155 = arith.index_cast %154 : i32 to index
    %c3_63 = arith.constant 3 : index
    %156 = memref.load %arg6[%155, %c3_63] : memref<4x8xf32, #tpu.memory_space<smem>>
    %157 = vector.broadcast %156 : f32 to vector<32x32xf32>
    %158 = arith.mulf %49, %157 : vector<32x32xf32>
    %159 = arith.addf %153, %158 : vector<32x32xf32>
    %c2_i32_64 = arith.constant 2 : i32
    %160 = arith.addi %0, %c2_i32_64 : i32
    %161 = arith.index_cast %160 : i32 to index
    %c3_65 = arith.constant 3 : index
    %162 = memref.load %arg6[%161, %c3_65] : memref<4x8xf32, #tpu.memory_space<smem>>
    %163 = vector.broadcast %162 : f32 to vector<32x32xf32>
    %164 = arith.mulf %66, %163 : vector<32x32xf32>
    %165 = arith.addf %159, %164 : vector<32x32xf32>
    %c3_i32_66 = arith.constant 3 : i32
    %166 = arith.addi %0, %c3_i32_66 : i32
    %167 = arith.index_cast %166 : i32 to index
    %c3_67 = arith.constant 3 : index
    %168 = memref.load %arg6[%167, %c3_67] : memref<4x8xf32, #tpu.memory_space<smem>>
    %169 = vector.broadcast %168 : f32 to vector<32x32xf32>
    %170 = arith.mulf %83, %169 : vector<32x32xf32>
    %171 = arith.addf %165, %170 : vector<32x32xf32>
    %172 = arith.index_cast %0 : i32 to index
    %c4 = arith.constant 4 : index
    %173 = memref.load %arg6[%172, %c4] : memref<4x8xf32, #tpu.memory_space<smem>>
    %174 = vector.broadcast %173 : f32 to vector<32x32xf32>
    %175 = arith.mulf %32, %174 : vector<32x32xf32>
    %c1_i32_68 = arith.constant 1 : i32
    %176 = arith.addi %0, %c1_i32_68 : i32
    %177 = arith.index_cast %176 : i32 to index
    %c4_69 = arith.constant 4 : index
    %178 = memref.load %arg6[%177, %c4_69] : memref<4x8xf32, #tpu.memory_space<smem>>
    %179 = vector.broadcast %178 : f32 to vector<32x32xf32>
    %180 = arith.mulf %49, %179 : vector<32x32xf32>
    %181 = arith.addf %175, %180 : vector<32x32xf32>
    %c2_i32_70 = arith.constant 2 : i32
    %182 = arith.addi %0, %c2_i32_70 : i32
    %183 = arith.index_cast %182 : i32 to index
    %c4_71 = arith.constant 4 : index
    %184 = memref.load %arg6[%183, %c4_71] : memref<4x8xf32, #tpu.memory_space<smem>>
    %185 = vector.broadcast %184 : f32 to vector<32x32xf32>
    %186 = arith.mulf %66, %185 : vector<32x32xf32>
    %187 = arith.addf %181, %186 : vector<32x32xf32>
    %c3_i32_72 = arith.constant 3 : i32
    %188 = arith.addi %0, %c3_i32_72 : i32
    %189 = arith.index_cast %188 : i32 to index
    %c4_73 = arith.constant 4 : index
    %190 = memref.load %arg6[%189, %c4_73] : memref<4x8xf32, #tpu.memory_space<smem>>
    %191 = vector.broadcast %190 : f32 to vector<32x32xf32>
    %192 = arith.mulf %83, %191 : vector<32x32xf32>
    %193 = arith.addf %187, %192 : vector<32x32xf32>
    %194 = arith.index_cast %0 : i32 to index
    %c5 = arith.constant 5 : index
    %195 = memref.load %arg6[%194, %c5] : memref<4x8xf32, #tpu.memory_space<smem>>
    %196 = vector.broadcast %195 : f32 to vector<32x32xf32>
    %197 = arith.mulf %32, %196 : vector<32x32xf32>
    %c1_i32_74 = arith.constant 1 : i32
    %198 = arith.addi %0, %c1_i32_74 : i32
    %199 = arith.index_cast %198 : i32 to index
    %c5_75 = arith.constant 5 : index
    %200 = memref.load %arg6[%199, %c5_75] : memref<4x8xf32, #tpu.memory_space<smem>>
    %201 = vector.broadcast %200 : f32 to vector<32x32xf32>
    %202 = arith.mulf %49, %201 : vector<32x32xf32>
    %203 = arith.addf %197, %202 : vector<32x32xf32>
    %c2_i32_76 = arith.constant 2 : i32
    %204 = arith.addi %0, %c2_i32_76 : i32
    %205 = arith.index_cast %204 : i32 to index
    %c5_77 = arith.constant 5 : index
    %206 = memref.load %arg6[%205, %c5_77] : memref<4x8xf32, #tpu.memory_space<smem>>
    %207 = vector.broadcast %206 : f32 to vector<32x32xf32>
    %208 = arith.mulf %66, %207 : vector<32x32xf32>
    %209 = arith.addf %203, %208 : vector<32x32xf32>
    %c3_i32_78 = arith.constant 3 : i32
    %210 = arith.addi %0, %c3_i32_78 : i32
    %211 = arith.index_cast %210 : i32 to index
    %c5_79 = arith.constant 5 : index
    %212 = memref.load %arg6[%211, %c5_79] : memref<4x8xf32, #tpu.memory_space<smem>>
    %213 = vector.broadcast %212 : f32 to vector<32x32xf32>
    %214 = arith.mulf %83, %213 : vector<32x32xf32>
    %215 = arith.addf %209, %214 : vector<32x32xf32>
    %216 = arith.index_cast %0 : i32 to index
    %c6 = arith.constant 6 : index
    %217 = memref.load %arg6[%216, %c6] : memref<4x8xf32, #tpu.memory_space<smem>>
    %218 = vector.broadcast %217 : f32 to vector<32x32xf32>
    %219 = arith.mulf %32, %218 : vector<32x32xf32>
    %c1_i32_80 = arith.constant 1 : i32
    %220 = arith.addi %0, %c1_i32_80 : i32
    %221 = arith.index_cast %220 : i32 to index
    %c6_81 = arith.constant 6 : index
    %222 = memref.load %arg6[%221, %c6_81] : memref<4x8xf32, #tpu.memory_space<smem>>
    %223 = vector.broadcast %222 : f32 to vector<32x32xf32>
    %224 = arith.mulf %49, %223 : vector<32x32xf32>
    %225 = arith.addf %219, %224 : vector<32x32xf32>
    %c2_i32_82 = arith.constant 2 : i32
    %226 = arith.addi %0, %c2_i32_82 : i32
    %227 = arith.index_cast %226 : i32 to index
    %c6_83 = arith.constant 6 : index
    %228 = memref.load %arg6[%227, %c6_83] : memref<4x8xf32, #tpu.memory_space<smem>>
    %229 = vector.broadcast %228 : f32 to vector<32x32xf32>
    %230 = arith.mulf %66, %229 : vector<32x32xf32>
    %231 = arith.addf %225, %230 : vector<32x32xf32>
    %c3_i32_84 = arith.constant 3 : i32
    %232 = arith.addi %0, %c3_i32_84 : i32
    %233 = arith.index_cast %232 : i32 to index
    %c6_85 = arith.constant 6 : index
    %234 = memref.load %arg6[%233, %c6_85] : memref<4x8xf32, #tpu.memory_space<smem>>
    %235 = vector.broadcast %234 : f32 to vector<32x32xf32>
    %236 = arith.mulf %83, %235 : vector<32x32xf32>
    %237 = arith.addf %231, %236 : vector<32x32xf32>
    %238 = arith.index_cast %0 : i32 to index
    %c7 = arith.constant 7 : index
    %239 = memref.load %arg6[%238, %c7] : memref<4x8xf32, #tpu.memory_space<smem>>
    %240 = vector.broadcast %239 : f32 to vector<32x32xf32>
    %241 = arith.mulf %32, %240 : vector<32x32xf32>
    %c1_i32_86 = arith.constant 1 : i32
    %242 = arith.addi %0, %c1_i32_86 : i32
    %243 = arith.index_cast %242 : i32 to index
    %c7_87 = arith.constant 7 : index
    %244 = memref.load %arg6[%243, %c7_87] : memref<4x8xf32, #tpu.memory_space<smem>>
    %245 = vector.broadcast %244 : f32 to vector<32x32xf32>
    %246 = arith.mulf %49, %245 : vector<32x32xf32>
    %247 = arith.addf %241, %246 : vector<32x32xf32>
    %c2_i32_88 = arith.constant 2 : i32
    %248 = arith.addi %0, %c2_i32_88 : i32
    %249 = arith.index_cast %248 : i32 to index
    %c7_89 = arith.constant 7 : index
    %250 = memref.load %arg6[%249, %c7_89] : memref<4x8xf32, #tpu.memory_space<smem>>
    %251 = vector.broadcast %250 : f32 to vector<32x32xf32>
    %252 = arith.mulf %66, %251 : vector<32x32xf32>
    %253 = arith.addf %247, %252 : vector<32x32xf32>
    %c3_i32_90 = arith.constant 3 : i32
    %254 = arith.addi %0, %c3_i32_90 : i32
    %255 = arith.index_cast %254 : i32 to index
    %c7_91 = arith.constant 7 : index
    %256 = memref.load %arg6[%255, %c7_91] : memref<4x8xf32, #tpu.memory_space<smem>>
    %257 = vector.broadcast %256 : f32 to vector<32x32xf32>
    %258 = arith.mulf %83, %257 : vector<32x32xf32>
    %259 = arith.addf %253, %258 : vector<32x32xf32>
    %c0_92 = arith.constant 0 : index
    %260 = memref.load %arg7[%c0_92] : memref<8xf32, #tpu.memory_space<smem>>
    %261 = vector.broadcast %260 : f32 to vector<32x32xf32>
    %262 = arith.addf %105, %261 : vector<32x32xf32>
    %cst_93 = arith.constant 0.000000e+00 : f32
    %263 = vector.broadcast %cst_93 : f32 to vector<32x32xf32>
    %264 = arith.cmpf ogt, %262, %263 : vector<32x32xf32>
    %cst_94 = arith.constant 0.00999999977 : f32
    %265 = vector.broadcast %cst_94 : f32 to vector<32x32xf32>
    %266 = arith.mulf %265, %262 : vector<32x32xf32>
    %267 = arith.select %264, %262, %266 : vector<32x32xi1>, vector<32x32xf32>
    %c0_95 = arith.constant 0 : index
    %c0_96 = arith.constant 0 : index
    %c0_97 = arith.constant 0 : index
    %c0_98 = arith.constant 0 : index
    %268 = vector.load %arg8[%c0_95, %c0_96, %c0_97, %c0_98] : memref<1x8x32x32xf32, #tpu.memory_space<vmem>>, vector<1x1x32x32xf32>
    %269 = vector.shape_cast %268 : vector<1x1x32x32xf32> to vector<32x32xf32>
    %270 = vector.shape_cast %267 : vector<32x32xf32> to vector<1x1x32x32xf32>
    tpu.vector_store %arg8[%c0_95, %c0_96, %c0_97, %c0_98], %270 {strides = array<i32>} : memref<1x8x32x32xf32, #tpu.memory_space<vmem>>, vector<1x1x32x32xf32>,
    %c1_99 = arith.constant 1 : index
    %271 = memref.load %arg7[%c1_99] : memref<8xf32, #tpu.memory_space<smem>>
    %272 = vector.broadcast %271 : f32 to vector<32x32xf32>
    %273 = arith.addf %127, %272 : vector<32x32xf32>
    %cst_100 = arith.constant 0.000000e+00 : f32
    %274 = vector.broadcast %cst_100 : f32 to vector<32x32xf32>
    %275 = arith.cmpf ogt, %273, %274 : vector<32x32xf32>
    %cst_101 = arith.constant 0.00999999977 : f32
    %276 = vector.broadcast %cst_101 : f32 to vector<32x32xf32>
    %277 = arith.mulf %276, %273 : vector<32x32xf32>
    %278 = arith.select %275, %273, %277 : vector<32x32xi1>, vector<32x32xf32>
    %c0_102 = arith.constant 0 : index
    %c1_103 = arith.constant 1 : index
    %c0_104 = arith.constant 0 : index
    %c0_105 = arith.constant 0 : index
    %279 = vector.load %arg8[%c0_102, %c1_103, %c0_104, %c0_105] : memref<1x8x32x32xf32, #tpu.memory_space<vmem>>, vector<1x1x32x32xf32>
    %280 = vector.shape_cast %279 : vector<1x1x32x32xf32> to vector<32x32xf32>
    %281 = vector.shape_cast %278 : vector<32x32xf32> to vector<1x1x32x32xf32>
    tpu.vector_store %arg8[%c0_102, %c1_103, %c0_104, %c0_105], %281 {strides = array<i32>} : memref<1x8x32x32xf32, #tpu.memory_space<vmem>>, vector<1x1x32x32xf32>,
    %c2_106 = arith.constant 2 : index
    %282 = memref.load %arg7[%c2_106] : memref<8xf32, #tpu.memory_space<smem>>
    %283 = vector.broadcast %282 : f32 to vector<32x32xf32>
    %284 = arith.addf %149, %283 : vector<32x32xf32>
    %cst_107 = arith.constant 0.000000e+00 : f32
    %285 = vector.broadcast %cst_107 : f32 to vector<32x32xf32>
    %286 = arith.cmpf ogt, %284, %285 : vector<32x32xf32>
    %cst_108 = arith.constant 0.00999999977 : f32
    %287 = vector.broadcast %cst_108 : f32 to vector<32x32xf32>
    %288 = arith.mulf %287, %284 : vector<32x32xf32>
    %289 = arith.select %286, %284, %288 : vector<32x32xi1>, vector<32x32xf32>
    %c0_109 = arith.constant 0 : index
    %c2_110 = arith.constant 2 : index
    %c0_111 = arith.constant 0 : index
    %c0_112 = arith.constant 0 : index
    %290 = vector.load %arg8[%c0_109, %c2_110, %c0_111, %c0_112] : memref<1x8x32x32xf32, #tpu.memory_space<vmem>>, vector<1x1x32x32xf32>
    %291 = vector.shape_cast %290 : vector<1x1x32x32xf32> to vector<32x32xf32>
    %292 = vector.shape_cast %289 : vector<32x32xf32> to vector<1x1x32x32xf32>
    tpu.vector_store %arg8[%c0_109, %c2_110, %c0_111, %c0_112], %292 {strides = array<i32>} : memref<1x8x32x32xf32, #tpu.memory_space<vmem>>, vector<1x1x32x32xf32>,
    %c3_113 = arith.constant 3 : index
    %293 = memref.load %arg7[%c3_113] : memref<8xf32, #tpu.memory_space<smem>>
    %294 = vector.broadcast %293 : f32 to vector<32x32xf32>
    %295 = arith.addf %171, %294 : vector<32x32xf32>
    %cst_114 = arith.constant 0.000000e+00 : f32
    %296 = vector.broadcast %cst_114 : f32 to vector<32x32xf32>
    %297 = arith.cmpf ogt, %295, %296 : vector<32x32xf32>
    %cst_115 = arith.constant 0.00999999977 : f32
    %298 = vector.broadcast %cst_115 : f32 to vector<32x32xf32>
    %299 = arith.mulf %298, %295 : vector<32x32xf32>
    %300 = arith.select %297, %295, %299 : vector<32x32xi1>, vector<32x32xf32>
    %c0_116 = arith.constant 0 : index
    %c3_117 = arith.constant 3 : index
    %c0_118 = arith.constant 0 : index
    %c0_119 = arith.constant 0 : index
    %301 = vector.load %arg8[%c0_116, %c3_117, %c0_118, %c0_119] : memref<1x8x32x32xf32, #tpu.memory_space<vmem>>, vector<1x1x32x32xf32>
    %302 = vector.shape_cast %301 : vector<1x1x32x32xf32> to vector<32x32xf32>
    %303 = vector.shape_cast %300 : vector<32x32xf32> to vector<1x1x32x32xf32>
    tpu.vector_store %arg8[%c0_116, %c3_117, %c0_118, %c0_119], %303 {strides = array<i32>} : memref<1x8x32x32xf32, #tpu.memory_space<vmem>>, vector<1x1x32x32xf32>,
    %c4_120 = arith.constant 4 : index
    %304 = memref.load %arg7[%c4_120] : memref<8xf32, #tpu.memory_space<smem>>
    %305 = vector.broadcast %304 : f32 to vector<32x32xf32>
    %306 = arith.addf %193, %305 : vector<32x32xf32>
    %cst_121 = arith.constant 0.000000e+00 : f32
    %307 = vector.broadcast %cst_121 : f32 to vector<32x32xf32>
    %308 = arith.cmpf ogt, %306, %307 : vector<32x32xf32>
    %cst_122 = arith.constant 0.00999999977 : f32
    %309 = vector.broadcast %cst_122 : f32 to vector<32x32xf32>
    %310 = arith.mulf %309, %306 : vector<32x32xf32>
    %311 = arith.select %308, %306, %310 : vector<32x32xi1>, vector<32x32xf32>
    %c0_123 = arith.constant 0 : index
    %c4_124 = arith.constant 4 : index
    %c0_125 = arith.constant 0 : index
    %c0_126 = arith.constant 0 : index
    %312 = vector.load %arg8[%c0_123, %c4_124, %c0_125, %c0_126] : memref<1x8x32x32xf32, #tpu.memory_space<vmem>>, vector<1x1x32x32xf32>
    %313 = vector.shape_cast %312 : vector<1x1x32x32xf32> to vector<32x32xf32>
    %314 = vector.shape_cast %311 : vector<32x32xf32> to vector<1x1x32x32xf32>
    tpu.vector_store %arg8[%c0_123, %c4_124, %c0_125, %c0_126], %314 {strides = array<i32>} : memref<1x8x32x32xf32, #tpu.memory_space<vmem>>, vector<1x1x32x32xf32>,
    %c5_127 = arith.constant 5 : index
    %315 = memref.load %arg7[%c5_127] : memref<8xf32, #tpu.memory_space<smem>>
    %316 = vector.broadcast %315 : f32 to vector<32x32xf32>
    %317 = arith.addf %215, %316 : vector<32x32xf32>
    %cst_128 = arith.constant 0.000000e+00 : f32
    %318 = vector.broadcast %cst_128 : f32 to vector<32x32xf32>
    %319 = arith.cmpf ogt, %317, %318 : vector<32x32xf32>
    %cst_129 = arith.constant 0.00999999977 : f32
    %320 = vector.broadcast %cst_129 : f32 to vector<32x32xf32>
    %321 = arith.mulf %320, %317 : vector<32x32xf32>
    %322 = arith.select %319, %317, %321 : vector<32x32xi1>, vector<32x32xf32>
    %c0_130 = arith.constant 0 : index
    %c5_131 = arith.constant 5 : index
    %c0_132 = arith.constant 0 : index
    %c0_133 = arith.constant 0 : index
    %323 = vector.load %arg8[%c0_130, %c5_131, %c0_132, %c0_133] : memref<1x8x32x32xf32, #tpu.memory_space<vmem>>, vector<1x1x32x32xf32>
    %324 = vector.shape_cast %323 : vector<1x1x32x32xf32> to vector<32x32xf32>
    %325 = vector.shape_cast %322 : vector<32x32xf32> to vector<1x1x32x32xf32>
    tpu.vector_store %arg8[%c0_130, %c5_131, %c0_132, %c0_133], %325 {strides = array<i32>} : memref<1x8x32x32xf32, #tpu.memory_space<vmem>>, vector<1x1x32x32xf32>,
    %c6_134 = arith.constant 6 : index
    %326 = memref.load %arg7[%c6_134] : memref<8xf32, #tpu.memory_space<smem>>
    %327 = vector.broadcast %326 : f32 to vector<32x32xf32>
    %328 = arith.addf %237, %327 : vector<32x32xf32>
    %cst_135 = arith.constant 0.000000e+00 : f32
    %329 = vector.broadcast %cst_135 : f32 to vector<32x32xf32>
    %330 = arith.cmpf ogt, %328, %329 : vector<32x32xf32>
    %cst_136 = arith.constant 0.00999999977 : f32
    %331 = vector.broadcast %cst_136 : f32 to vector<32x32xf32>
    %332 = arith.mulf %331, %328 : vector<32x32xf32>
    %333 = arith.select %330, %328, %332 : vector<32x32xi1>, vector<32x32xf32>
    %c0_137 = arith.constant 0 : index
    %c6_138 = arith.constant 6 : index
    %c0_139 = arith.constant 0 : index
    %c0_140 = arith.constant 0 : index
    %334 = vector.load %arg8[%c0_137, %c6_138, %c0_139, %c0_140] : memref<1x8x32x32xf32, #tpu.memory_space<vmem>>, vector<1x1x32x32xf32>
    %335 = vector.shape_cast %334 : vector<1x1x32x32xf32> to vector<32x32xf32>
    %336 = vector.shape_cast %333 : vector<32x32xf32> to vector<1x1x32x32xf32>
    tpu.vector_store %arg8[%c0_137, %c6_138, %c0_139, %c0_140], %336 {strides = array<i32>} : memref<1x8x32x32xf32, #tpu.memory_space<vmem>>, vector<1x1x32x32xf32>,
    %c7_141 = arith.constant 7 : index
    %337 = memref.load %arg7[%c7_141] : memref<8xf32, #tpu.memory_space<smem>>
    %338 = vector.broadcast %337 : f32 to vector<32x32xf32>
    %339 = arith.addf %259, %338 : vector<32x32xf32>
    %cst_142 = arith.constant 0.000000e+00 : f32
    %340 = vector.broadcast %cst_142 : f32 to vector<32x32xf32>
    %341 = arith.cmpf ogt, %339, %340 : vector<32x32xf32>
    %cst_143 = arith.constant 0.00999999977 : f32
    %342 = vector.broadcast %cst_143 : f32 to vector<32x32xf32>
    %343 = arith.mulf %342, %339 : vector<32x32xf32>
    %344 = arith.select %341, %339, %343 : vector<32x32xi1>, vector<32x32xf32>
    %c0_144 = arith.constant 0 : index
    %c7_145 = arith.constant 7 : index
    %c0_146 = arith.constant 0 : index
    %c0_147 = arith.constant 0 : index
    %345 = vector.load %arg8[%c0_144, %c7_145, %c0_146, %c0_147] : memref<1x8x32x32xf32, #tpu.memory_space<vmem>>, vector<1x1x32x32xf32>
    %346 = vector.shape_cast %345 : vector<1x1x32x32xf32> to vector<32x32xf32>
    %347 = vector.shape_cast %344 : vector<32x32xf32> to vector<1x1x32x32xf32>
    tpu.vector_store %arg8[%c0_144, %c7_145, %c0_146, %c0_147], %347 {strides = array<i32>} : memref<1x8x32x32xf32, #tpu.memory_space<vmem>>, vector<1x1x32x32xf32>,
    return
  }
  func.func @transform_0(%arg0: i32, %arg1: i32) -> (i32, i32, i32) {
    %c0_i32 = arith.constant 0 : i32
    %c0_i32_0 = arith.constant 0 : i32
    return %arg0, %arg1, %c0_i32 : i32, i32, i32
  }
  func.func @transform_1(%arg0: i32, %arg1: i32) -> (i32, i32, i32) {
    %c0_i32 = arith.constant 0 : i32
    %c0_i32_0 = arith.constant 0 : i32
    %c0_i32_1 = arith.constant 0 : i32
    %c0_i32_2 = arith.constant 0 : i32
    return %c0_i32, %c0_i32_0, %c0_i32_1 : i32, i32, i32
  }
  func.func @transform_2(%arg0: i32, %arg1: i32) -> (i32, i32, i32) {
    %c0_i32 = arith.constant 0 : i32
    %c0_i32_0 = arith.constant 0 : i32
    %c0_i32_1 = arith.constant 0 : i32
    return %arg1, %c0_i32, %c0_i32_0 : i32, i32, i32
  }
  func.func @transform_3(%arg0: i32, %arg1: i32) -> i32 {
    %c0_i32 = arith.constant 0 : i32
    %c0_i32_0 = arith.constant 0 : i32
    return %c0_i32 : i32
  }
  func.func @transform_4(%arg0: i32, %arg1: i32) -> (i32, i32) {
    %c0_i32 = arith.constant 0 : i32
    %c0_i32_0 = arith.constant 0 : i32
    %c0_i32_1 = arith.constant 0 : i32
    return %c0_i32, %c0_i32_0 : i32, i32
  }
  func.func @transform_5(%arg0: i32, %arg1: i32) -> i32 {
    %c0_i32 = arith.constant 0 : i32
    %c0_i32_0 = arith.constant 0 : i32
    return %c0_i32 : i32
  }
  func.func @transform_6(%arg0: i32, %arg1: i32) -> (i32, i32, i32, i32) {
    %c0_i32 = arith.constant 0 : i32
    %c0_i32_0 = arith.constant 0 : i32
    %c0_i32_1 = arith.constant 0 : i32
    %c0_i32_2 = arith.constant 0 : i32
    return %arg0, %c0_i32, %c0_i32_0, %c0_i32_1 : i32, i32, i32, i32
  }
}

</mosaic_0001>

<bundles_post_ra>
// kernel: ds_upconv_bilinear.1
= control target key start
LH: loop header
LB: loop body
LE: loop exit
PB: predicated region body
PF: predicated region fallthrough
CT: control target
= control target key end

     0   :  { %s3469_s0 = inlined_call_operand.vmem [shape: f32[2,64,16], index: 0, kind: input, shape index: {}]   ;;  %s3470_s1 = inlined_call_operand.vmem [shape: f32[3,16,32], index: 1, kind: input, shape index: {}]   ;;  %s3471_s2 = inlined_call_operand.vmem [shape: f32[4,32,48], index: 2, kind: input, shape index: {}]   ;;  %s3472_s3 = inlined_call_operand.vmem [shape: f32[4], index: 3, kind: input, shape index: {}]   ;;  %s3473_s4 = inlined_call_operand.vmem [shape: f32[4,8], index: 4, kind: input, shape index: {}]   ;;  %s3474_s5 = inlined_call_operand.vmem [shape: f32[8], index: 5, kind: input, shape index: {}]   ;;  %s3475_s6 = inlined_call_operand.hbm [shape: f32[2,8,32,32], index: 6, kind: output, shape index: {}]  }
   0x1   :  { %3510 = sst [smem:[#allocation53_spill]] %s3469_s0 }
   0x2   :  { %3511 = sst [smem:[#allocation54_spill]] %s3470_s1 }
   0x3   :  { %3512 = sst [smem:[#allocation55_spill]] %s3471_s2 }
   0x4   :  { %3513 = sst [smem:[#allocation56_spill]] %s3472_s3 }
   0x5   :  { %3514 = sst [smem:[#allocation57_spill]] %s3473_s4 }
   0x6   :  { %3515 = sst [smem:[#allocation58_spill]] %s3474_s5 }
   0x7   :  { %3516 = sst [smem:[#allocation59_spill]] %s3475_s6 }
   0x8   :  { %11 = vsyncpa [#allocation4], 0 }
   0x9   :  { %12 = vsyncpa [#allocation6], 0 }
   0xa   :  { %13 = vsyncpa [#allocation3], 0 }
   0xb   :  { %15 = vsyncpa [#allocation3 + $0x1], 0  ;;  %s2467_s21 = smov 0   ;;  %s2469_s22 = smov 0  }
   0xc   :  { %s2471_s23 = smov 0   ;;  %s2473_s24 = smov 0  }
   0xd   :  { %s2475_s25 = smov 0   ;;  %s2477_s26 = smov 0  }
   0xe LB: > { %3517 = sst [smem:[#allocation12_spill]] %s2404_s21  ;;  %s1806_s27 = sadd.s32 4294967295, %s2424_s26   ;;  %s2424_s26 = sphi %s2477_s26, %s21_s26   ;;  %s2420_s25 = sphi %s2475_s25, %s3620_s25   ;;  %s2416_s24 = sphi %s2473_s24, %s3619_s24   ;;  %s2412_s23 = sphi %s2471_s23, %s3618_s23   ;;  %s2408_s22 = sphi %s2469_s22, %s3617_s22   ;;  %s2404_s21 = sphi %s2467_s21, %s3616_s21  }
   0xf   : > { %3518 = sst [smem:[#allocation13_spill]] %s2408_s22  ;;  %s1807_s28 = sadd.s32 4294967294, %s2424_s26  }
  0x10   : > { %3519 = sst [smem:[#allocation14_spill]] %s2412_s23  ;;  %s33_s29 = sadd.s32 1, %s2420_s25 }
  0x11   : > { %3520 = sst [smem:[#allocation15_spill]] %s2416_s24  ;;  %s178_s30 = sadd.s32 1, %s2412_s23 }
  0x12   : > { %3521 = sst [smem:[#allocation16_spill]] %s2420_s25  ;;  %p35_p0 = scmp.ge.s32.totalorder %s33_s29, 2 }
  0x13   : > { %3522 = sst [smem:[#allocation17_spill]] %s2424_s26  ;;  %p188_p1 = scmp.ne.s32.totalorder %s2412_s23, %s2408_s22 }
  0x14   : > { %p189_p2 = scmp.eq.s32.totalorder %s1806_s27, 1  ;;  %p194_p3 = scmp.ne.s32.totalorder %s2408_s22, %s2404_s21 }
  0x15   : > { %s3622_s29 = smov (%p35_p0, %s33_s29), 0  ;;  %p195_p5 = scmp.eq.s32.totalorder %s1807_s28, 1 }
  0x16   : > { %3523 = sst [smem:[#allocation18_spill]] %s3622_s29  ;;  %p2507_p4 = por %p189_p2, %p188_p1 }
  0x17   : > { %s175_s8 = ssub.s32 %s2420_s25, %s3622_s29  ;;  %p1808_p6 = scmp.ge.s32.totalorder %s2424_s26, 1 }
  0x18   : > { %s3524_s7 = scalar_select %p2507_p4, 1, 0 }
  0x19   : > { %p176_p7 = scmp.eq.s32.totalorder %s175_s8, 0  ;;  %p2514_p8 = por %p195_p5, %p194_p3 }
  0x1a   : > { %3525 = sst [smem:[#allocation19_spill]] %s3524_s7  ;;  %p202_p9 = scmp.lt.s32.totalorder %s2424_s26, 3 }
  0x1b   : > { %s3526_s9 = scalar_select %p2514_p8, 1, 0 }
  0x1c   : > { %s2520_s10 = scalar_select %p176_p7, %s2412_s23, %s178_s30  }
  0x1d   : > { %3527 = sst [smem:[#allocation20_spill]] %s3526_s9  ;;  %p2522_p10 = pnand %p1808_p6, %p202_p9 }
  0x1e   : > { %3528 = sst [smem:[#allocation21_spill]] %s2520_s10  ;;  %p2526_p11 = scmp.eq.s32.totalorder %s1806_s27, 0 }
  0x1f   : > { %s3529_s11 = scalar_select %p2522_p10, 1, 0 }
  0x20   : > { %s3530_s12 = scalar_select %p2526_p11, 1, 0 }
  0x21   : > { %s3531_s4 = sld [smem:[#allocation57_spill]]  ;;  %p2219_p12 = pneg %p2522_p10 }
  0x22   : > { %s3532_s3 = sld [smem:[#allocation56_spill]]  ;;  %s3534_s5 = sld [smem:[#allocation58_spill]] }
  0x23   : > { %p2540_p13 = pnand %p2526_p11, %p2219_p12 }
  0x25   : > { %p2295_p1 = pneg %p2540_p13 }
  0x27   : > { %s239_s15 = sshll.u32 %s3531_s4, 4  ;;  %s240_s15 = int_to_ptr.vmem [resolvable:$true] %s239_s15 }
  0x28   : > { %s228_s18 = sshll.u32 %s3532_s3, 4  ;;  %s250_s28 = sshll.u32 %s3534_s5, 4  ;;  %s229_s18 = int_to_ptr.vmem [resolvable:$true] %s228_s18  ;;  %s251_s28 = int_to_ptr.vmem [resolvable:$true] %s250_s28 }
  0x29   : > { %s2293_s30 = scalar_lea.vmem %s240_s15, 64  ;;  %p2301_p5 = scmp.lt.s32.totalorder %s240_s15, %s240_s15 }
  0x2a   : > { %p2294_p0 = scmp.ne.s32.totalorder %s240_s15, %s2293_s30  ;;  %p2302_p6 = scmp.lt.s32.totalorder %s2293_s30, %s2293_s30 }
  0x2c   : > { %p2296_p2 = pnand %p2295_p1, %p2294_p0  ;;  %p2303_p7 = por %p2302_p6, %p2301_p5 }
  0x2e   : > { %p2297_p3 = pneg %p2296_p2 }
  0x30   : > { %p2304_p9 = pnand %p2303_p7, %p2297_p3 }
  0x32   : > { %2307 = shalt.err (!%p2304_p9)
}
  0x33   : > { %s2426_s8 = smov [#allocation5]   ;;  %s2308_s13 = scalar_lea.vmem %s229_s18, 16 }
  0x34   : > { %2225 = dma.vmem_to_smem (!%p2540_p13), %s240_s15, 64, %s2426_s8, [#allocation6]  }
  0x35   : > { %p2309_p12 = scmp.ne.s32.totalorder %s229_s18, %s2308_s13  ;;  %p2316_p11 = scmp.lt.s32.totalorder %s229_s18, %s229_s18 }
  0x36   : > { %p2317_p10 = scmp.lt.s32.totalorder %s2308_s13, %s2308_s13 }
  0x37   : > { %p2311_p8 = pnand %p2309_p12, %p2295_p1 }
  0x38   : > { %p2318_p0 = por %p2317_p10, %p2316_p11 }
  0x39   : > { %p2312_p4 = pneg %p2311_p8 }
  0x3b   : > { %p2319_p2 = pnand %p2318_p0, %p2312_p4 }
  0x3d   : > { %2322 = shalt.err (!%p2319_p2)
}
  0x3e   : > { %s2427_s14 = smov [#allocation2]   ;;  %s2323_s16 = scalar_lea.vmem %s251_s28, 16 }
  0x3f   : > { %2222 = dma.vmem_to_smem (!%p2540_p13), %s229_s18, 16, %s2427_s14, [#allocation4]  }
  0x40   : > { %p2324_p3 = scmp.ne.s32.totalorder %s251_s28, %s2323_s16  ;;  %p2331_p7 = scmp.lt.s32.totalorder %s251_s28, %s251_s28 }
  0x41   : > { %p2332_p9 = scmp.lt.s32.totalorder %s2323_s16, %s2323_s16 }
  0x42   : > { %p2326_p5 = pnand %p2324_p3, %p2295_p1 }
  0x43   : > { %p2333_p8 = por %p2332_p9, %p2331_p7 }
  0x44   : > { %p2327_p6 = pneg %p2326_p5 }
  0x46   : > { %p2334_p12 = pnand %p2333_p8, %p2327_p6 }
  0x48   : > { %2337 = shalt.err (!%p2334_p12)
}
  0x49   : > { %s2428_s15 = smov [#allocation7]   ;;  %p3535_p4 = scmp.ne.s32.totalorder %s3529_s11, 0 }
  0x4a   : > { %2228 = dma.vmem_to_smem (!%p2540_p13), %s251_s28, 16, %s2428_s15, [#allocation6]  }
  0x4b   : > { %276 = sbr.rel (%p3535_p4) target bundleno = 679 (0x2a7), region = 44 }
  0x52   : > { %p3536_p10 = scmp.ne.s32.totalorder %s3530_s12, 0 }
  0x54   : > { %2391 = dma.done.wait (%p3536_p10), [#allocation4], 16  }
  0x55   : > { %2393 = vsyncadd (%p3536_p10), [#allocation4], 4294967280 }
  0x56   : > { %2395 = dma.done.wait (%p3536_p10), [#allocation6], 80  }
  0x57   : > { %2397 = vsyncadd (%p3536_p10), [#allocation6], 4294967216 }
  0x58   : > { %290 = sfence }
  0x59   : > { %s3537_s1 = sld [smem:[#allocation54_spill]]  ;;  %p326_p11 = scmp.lt.s32.totalorder %s2416_s24, 1  ;;  %vm353_vm0 = vcmask 130048   ;;  %vm705_vm1 = vcmask 392192   ;;  %vm1504_vm15 = vcmask 261120  }
  0x5a   : > { %s3538_s0 = sld [smem:[#allocation53_spill]]  ;;  %s3539_s2 = sld [smem:[#allocation55_spill]] }
  0x5b   : > { %s327_s30 = scalar_select %p326_p11, %s2416_s24, 1 }
  0x5c   : > { %s2685_s12 = sld [smem:[#allocation2]]  ;;  %s2689_s8 = sld [smem:[#allocation5 + $0x1]] }
  0x5d   : > { %s1951_s15 = sshll.u32 %s327_s30, 6  ;;  %s2687_s30 = sld [smem:[#allocation5]] }
  0x5e   : > { %s2691_s13 = sld [smem:[#allocation5 + $0x2]]  ;;  %s2693_s14 = sld [smem:[#allocation5 + $0x3]] }
  0x5f   : > { %v351_v0 = vld [vmem:[%s3537_s1] sm:$0xff]  ;;  %v352_v1 = vld [vmem:[%s3537_s1 + $0x8] sm:$0xff]  ;;  %v1829_v2 = vld [vmem:[%s3537_s1 + $0x10] sm:$0xff]  ;;  %s2695_s16 = sld [smem:[#allocation5 + $0x4]]  ;;  %s2699_s17 = sld [smem:[#allocation5 + $0x6]] }
  0x60   : > { %v2143_v3 = vpack.c.bf16 %v352_v1, %v351_v0  ;;  %v1830_v4 = vld [vmem:[%s3537_s1 + $0x18] sm:$0xff]  ;;  %v1839_v6 = vld [vmem:[%s3537_s1 + $0x20] sm:$0xff]  ;;  %v1840_v7 = vld [vmem:[%s3537_s1 + $0x28] sm:$0xff]  ;;  %s333_s11 = scalar_lea.vmem %s3538_s0, %s1951_s15  ;;  %s2697_s15 = sld [smem:[#allocation5 + $0x5]] }
  0x61   : > { %v2147_v5 = vpack.c.bf16 %v1830_v4, %v1829_v2  ;;  %v343_v8 = vld [vmem:[%s333_s11] sm:$0xff]  ;;  %v344_v9 = vld [vmem:[%s333_s11 + $0x8] sm:$0xff]  ;;  %v345_v10 = vld [vmem:[%s333_s11 + $0x10] sm:$0xff]  ;;  %v2151_v11 = vpack.c.bf16 %v1840_v7, %v1839_v6  ;;  %s2701_s18 = sld [smem:[#allocation5 + $0x7]]  ;;  %s2705_s19 = sld [smem:[#allocation5 + $0x80]] }
  0x62   : > { %2144 = vmatprep.subr.bf16.mxu0 %v2143_v3  ;;  %2027 = vmatprep.mubr.msk.f32.mxu0 %vm353_vm0, %v343_v8  ;;  %v346_v12 = vld [vmem:[%s333_s11 + $0x18] sm:$0xff]  ;;  %v347_v13 = vld [vmem:[%s333_s11 + $0x20] sm:$0xff]  ;;  %v348_v14 = vld [vmem:[%s333_s11 + $0x28] sm:$0xff]  ;;  %s2707_s20 = sld [smem:[#allocation5 + $0x81]]  ;;  %s2709_s27 = sld [smem:[#allocation5 + $0x82]]  ;;  %v2762_v7 = vstv %s2689_s8 }
  0x63   : > { %2146 = vmatpush3.bf16.msra.mxu0 %v2143_v3  ;;  %2203 = vmatprep.subr.bf16.mxu1 %v2147_v5  ;;  %v349_v15 = vld [vmem:[%s333_s11 + $0x30] sm:$0xff]  ;;  %v350_v16 = vld [vmem:[%s333_s11 + $0x38] sm:$0xff]  ;;  %v699_v17 = vld [vmem:[%s3539_s2] sm:$0xff]  ;;  %s2703_s11 = sld [smem:[#allocation2 + $0x1]]  ;;  %s2711_s28 = sld [smem:[#allocation5 + $0x83]]  ;;  %v2755_v6 = vstv %s2687_s30 }
  0x64   : > { %2148 = vmatprep.subr.bf16.mxu0 %v2147_v5  ;;  %2204 = vmatpush3.bf16.msra.mxu1 %v2147_v5  ;;  %v1862_v18 = vld [vmem:[%s3539_s2 + $0x40] sm:$0xff]  ;;  %v700_v47 = vld [vmem:[%s3539_s2 + $0x8] sm:$0xff]  ;;  %v701_v50 = vld [vmem:[%s3539_s2 + $0x10] sm:$0xff]  ;;  %s2713_s0 = sld [smem:[#allocation5 + $0x84]]  ;;  %s2715_s1 = sld [smem:[#allocation5 + $0x85]] }
  0x65   : > { %2046 = vmatprep.mubr.msk.f32.mxu1 %vm353_vm0, %v345_v10  ;;  %v702_v52 = vld [vmem:[%s3539_s2 + $0x18] sm:$0xff]  ;;  %v1853_v55 = vld [vmem:[%s3539_s2 + $0x20] sm:$0xff]  ;;  %v1863_v58 = vld [vmem:[%s3539_s2 + $0x48] sm:$0xff]  ;;  %s2719_s3 = sld [smem:[#allocation5 + $0x87]]  ;;  %s2721_s4 = sld [smem:[#allocation2 + $0x2]] }
  0x66   : > { %2028 = vmatmul.mubr.msk.f32.vlgmr.msra.gmra.mrb[0].mxu0 %vm353_vm0, %v344_v9  ;;  %v1864_v60 = vld [vmem:[%s3539_s2 + $0x50] sm:$0xff]  ;;  %v1854_v61 = vld [vmem:[%s3539_s2 + $0x28] sm:$0xff]  ;;  %v1865_v63 = vld [vmem:[%s3539_s2 + $0x58] sm:$0xff]  ;;  %s2723_s5 = sld [smem:[#allocation5 + $0x100]]  ;;  %s2725_s29 = sld [smem:[#allocation5 + $0x101]] }
  0x67   : > { %2047 = vmatmul.mubr.msk.f32.vlgmr.msra.gmra.mrb[0].mxu1 %vm353_vm0, %v346_v12  ;;  %2150 = vmatpush3.bf16.msra.mxu0 %v2147_v5  ;;  %v1855_v62 = vld [vmem:[%s3539_s2 + $0x30] sm:$0xff]  ;;  %v1856_v0 = vld [vmem:[%s3539_s2 + $0x38] sm:$0xff]  ;;  %v1871_v1 = vld [vmem:[%s3539_s2 + $0x60] sm:$0xff]  ;;  %s2727_s25 = sld [smem:[#allocation5 + $0x102]]  ;;  %s2729_s10 = sld [smem:[#allocation5 + $0x103]]  ;;  %v2752_v5 = vstv %s2685_s12 }
  0x68   : > { %2030 = vmatprep.mubr.msk.f32.mxu0 %vm353_vm0, %v345_v10  ;;  %2152 = vmatprep.subr.bf16.mxu0 %v2151_v11  ;;  %v1872_v2 = vld [vmem:[%s3539_s2 + $0x68] sm:$0xff]  ;;  %v1873_v3 = vld [vmem:[%s3539_s2 + $0x70] sm:$0xff]  ;;  %v1874_v4 = vld [vmem:[%s3539_s2 + $0x78] sm:$0xff]  ;;  %s2717_s2 = sld [smem:[#allocation5 + $0x86]]  ;;  %s2731_s23 = sld [smem:[#allocation5 + $0x104]] }
  0x69   : > { %2049 = vmatprep.mubr.msk.f32.mxu1 %vm353_vm0, %v347_v13  ;;  %s2733_s9 = sld [smem:[#allocation5 + $0x105]]  ;;  %s2735_s21 = sld [smem:[#allocation5 + $0x106]] }
  0x6a   : > { %2031 = vmatmul.mubr.msk.f32.gmra.mrb[2].mxu0 %vm353_vm0, %v346_v12  ;;  %s2737_s26 = sld [smem:[#allocation5 + $0x107]]  ;;  %s2739_s6 = sld [smem:[#allocation2 + $0x3]] }
  0x6b   : > { %2050 = vmatmul.mubr.msk.f32.gmra.mrb[2].mxu1 %vm353_vm0, %v348_v14  ;;  %2033 = vmatprep.mubr.msk.f32.mxu0 %vm353_vm0, %v347_v13  ;;  %s2741_s7 = sld [smem:[#allocation5 + $0x180]]  ;;  %s2743_s24 = sld [smem:[#allocation5 + $0x181]] }
  0x6c   : > { %2052 = vmatprep.mubr.msk.f32.mxu1 %vm353_vm0, %v349_v15  ;;  %s2745_s22 = sld [smem:[#allocation5 + $0x182]]  ;;  %s2773_s12 = sld [smem:[#allocation5 + $0x187]] }
  0x6d   : > { %s2775_s30 = sld [smem:[#allocation7]]  ;;  %s2789_s8 = sld [smem:[#allocation7 + $0x1]] }
  0x6e   : > { %2034 = vmatmul.mubr.msk.f32.gmra.mrb[4].mxu0 %vm353_vm0, %v348_v14  ;;  %3540 = sst [smem:[#allocation22_spill]] %s2731_s23  ;;  %s2747_s23 = sld [smem:[#allocation5 + $0x183]] }
  0x6f   : > { %2053 = vmatmul.mubr.msk.f32.gmra.mrb[4].mxu1 %vm353_vm0, %v350_v16  ;;  %2036 = vmatprep.mubr.msk.f32.mxu0 %vm353_vm0, %v349_v15  ;;  %3541 = sst [smem:[#allocation23_spill]] %s2733_s9  ;;  %s2749_s9 = sld [smem:[#allocation5 + $0x184]] }
  0x70   : > { %2083 = vmatprep.mubr.msk.f32.mxu1 %vm705_vm1, %v699_v17  ;;  %3542 = sst [smem:[#allocation24_spill]] %s2739_s6  ;;  %s2757_s6 = sld [smem:[#allocation5 + $0x185]]  ;;  %v2800_v17 = vstv %s2709_s27 }
  0x71   : > { %3543 = sst [smem:[#allocation25_spill]] %s2741_s7  ;;  %s2759_s7 = sld [smem:[#allocation5 + $0x186]] }
  0x72   : > { %2037 = vmatmul.mubr.msk.f32.gmra.mrb[6].mxu0 %vm353_vm0, %v350_v16 }
  0x73   : > { %2043 = vmatprep.mubr.msk.f32.mxu0 %vm353_vm0, %v343_v8 }
  0x76   : > { %2044 = vmatmul.mubr.msk.f32.vlgmr.msra.gmra.mrb[8].mxu0 %vm353_vm0, %v344_v9 }
  0x77   : > { %2154 = vmatpush3.bf16.msra.mxu0 %v2151_v11  ;;  %2059 = vmatprep.mubr.msk.f32.mxu0 %vm353_vm0, %v343_v8  ;;  %v2765_v8 = vstv %s2691_s13  ;;  %v2778_v11 = vstv %s2697_s15  ;;  %s2791_s13 = sld [smem:[#allocation7 + $0x2]]  ;;  %s2805_s15 = sld [smem:[#allocation7 + $0x3]] }
  0x7a   : > { %2060 = vmatmul.mubr.msk.f32.vlgmr.msra.gmra.mrb[10].mxu0 %vm353_vm0, %v344_v9  ;;  %v2768_v9 = vstv %s2693_s14  ;;  %s3544_s14 = sld [smem:[#allocation22_spill]] }
  0x7b   : > { %2062 = vmatprep.mubr.msk.f32.mxu0 %vm353_vm0, %v345_v10  ;;  %v2771_v10 = vstv %s2695_s16  ;;  %s3545_s16 = sld [smem:[#allocation23_spill]] }
  0x7e   : > { %2063 = vmatmul.mubr.msk.f32.gmra.mrb[12].mxu0 %vm353_vm0, %v346_v12  ;;  %v2781_v12 = vstv %s2699_s17  ;;  %s2807_s17 = sld [smem:[#allocation7 + $0x4]] }
  0x7f   : > { %2065 = vmatprep.mubr.msk.f32.mxu0 %vm353_vm0, %v347_v13  ;;  %v2784_v13 = vstv %s2701_s18  ;;  %s3546_s18 = sld [smem:[#allocation24_spill]] }
  0x82   : > { %2066 = vmatmul.mubr.msk.f32.gmra.mrb[14].mxu0 %vm353_vm0, %v348_v14  ;;  %v2787_v14 = vstv %s2703_s11  ;;  %s3547_s11 = sld [smem:[#allocation25_spill]] }
  0x83   : > { %2068 = vmatprep.mubr.msk.f32.mxu0 %vm353_vm0, %v349_v15  ;;  %v2794_v15 = vstv %s2705_s19  ;;  %s2821_s19 = sld [smem:[#allocation7 + $0x5]] }
  0x86   : > { %2069 = vmatmul.mubr.msk.f32.gmra.mrb[16].mxu0 %vm353_vm0, %v350_v16  ;;  %v2797_v16 = vstv %s2707_s20  ;;  %s2429_s20 = smov [#allocation8]  }
  0x87   : > { %2119 = vmatprep.mubr.msk.f32.mxu0 %vm705_vm1, %v1862_v18  ;;  %v2803_v18 = vstv %s2711_s28  ;;  %s2342_s27 = sshll.u32 %s2429_s20, 4  ;;  %s2343_s27 = int_to_ptr.vmem [resolvable:$false] %s2342_s27 }
  0x88   : > { %s2344_s28 = scalar_lea.vmem %s2343_s27, 8192 }
 0x139   : > { %v2029_v19 = vpop.f32.mrb[0].mxu0 }
 0x13a   : > { %v2048_v20 = vpop.f32.mrb[0].mxu1  ;;  %v444_v21 = vpop.f32.mrb[1].mxu0 }
 0x13b   : > { %v562_v22 = vpop.f32.mrb[1].mxu1  ;;  %v2155_v23 = vpack.c.bf16 %v2029_v19, %v444_v21  ;;  %v2810_v19 = vstv %s2713_s0  ;;  %v2816_v21 = vstv %s2717_s2  ;;  %s2835_s0 = sld [smem:[#allocation7 + $0x6]]  ;;  %s3586_s2 = sld [smem:[#allocation13_spill]] }
 0x13c   : > { %v2171_v24 = vpack.c.bf16 %v2048_v20, %v562_v22  ;;  %v2813_v20 = vstv %s2715_s1  ;;  %v2819_v22 = vstv %s2719_s3  ;;  %s3177_s1 = sld [smem:[#allocation7 + $0x7]] }
 0x13d   : > { %v2032_v25 = vpop.f32.mrb[2].mxu0  ;;  %2156 = vmatprep.subr.bf16.mxu1 %v2155_v23 }
 0x13e   : > { %v2051_v26 = vpop.f32.mrb[2].mxu1  ;;  %v454_v27 = vpop.f32.mrb[3].mxu0  ;;  %2158 = vmatpush3.bf16.msra.mxu1 %v2155_v23  ;;  %v2824_v23 = vstv %s2721_s4 }
 0x13f   : > { %v572_v28 = vpop.f32.mrb[3].mxu1  ;;  %v2167_v29 = vpack.c.bf16 %v2032_v25, %v454_v27  ;;  %v2830_v25 = vstv %s2725_s29  ;;  %v2838_v27 = vstv %s2729_s10 }
 0x140   : > { %v2183_v30 = vpack.c.bf16 %v2051_v26, %v572_v28  ;;  %v2833_v26 = vstv %s2727_s25  ;;  %v2841_v28 = vstv %s3544_s14 }
 0x141   : > { %v2035_v31 = vpop.f32.mrb[4].mxu0  ;;  %s322_s3 = sand.u32 1, %s3586_s2  }
 0x142   : > { %v2054_v32 = vpop.f32.mrb[4].mxu1  ;;  %v464_v33 = vpop.f32.mrb[5].mxu0  ;;  %s1818_s4 = sshll.u32 %s322_s3, 8 }
 0x143   : > { %v582_v34 = vpop.f32.mrb[5].mxu1  ;;  %v2179_v35 = vpack.c.bf16 %v2035_v31, %v464_v33  ;;  %v2853_v33 = vstv %s3546_s18 }
 0x144   : > { %v2195_v36 = vpack.c.bf16 %v2054_v32, %v582_v34  ;;  %v2850_v32 = vstv %s2737_s26  ;;  %3548 = vst [vmem:[#allocation26_spill] sm:$0xff] %v2853_v33  ;;  %v2856_v34 = vstv %s3547_s11  ;;  %s3609_s26 = sld [smem:[#allocation59_spill]] }
 0x145   : > { %v2038_v37 = vpop.f32.mrb[6].mxu0  ;;  %2180 = vmatprep.subr.bf16.mxu0 %v2179_v35  ;;  %3549 = vst [vmem:[#allocation27_spill] sm:$0xff] %v2856_v34 }
 0x146   : > { %v474_v38 = vpop.f32.mrb[7].mxu0  ;;  %2182 = vmatpush3.bf16.msra.mxu0 %v2179_v35  ;;  %v2859_v35 = vstv %s2743_s24 }
 0x147   : > { %v2191_v39 = vpack.c.bf16 %v2038_v37, %v474_v38  ;;  %2184 = vmatprep.subr.bf16.mxu0 %v2183_v30  ;;  %3550 = vst [vmem:[#allocation28_spill] sm:$0xff] %v2859_v35  ;;  %v2863_v38 = vstv %s2745_s22 }
 0x148   : > { %3551 = vst [vmem:[#allocation29_spill] sm:$0xff] %v2863_v38 }
 0x149   : > { %v2045_v40 = vpop.f32.mrb[8].mxu0 }
 0x14a   : > { %v552_v41 = vpop.f32.mrb[9].mxu0  ;;  %2186 = vmatpush3.bf16.msra.mxu0 %v2183_v30  ;;  %v2847_v30 = vstv %s2735_s21  ;;  %s3610_s29 = smov %s3609_s26 }
 0x14b   : > { %v2159_v42 = vpack.c.bf16 %v2045_v40, %v552_v41  ;;  %v2869_v40 = vstv %s2749_s9  ;;  %s3423_s9 = scalar_lea.sflag [#allocation3], %s322_s3 }
 0x14c   : > { %3553 = vst [vmem:[#allocation31_spill] sm:$0xff] %v2869_v40 }
 0x14d   : > { %v2061_v43 = vpop.f32.mrb[10].mxu0  ;;  %2160 = vmatprep.subr.bf16.mxu1 %v2159_v42 }
 0x14e   : > { %v660_v44 = vpop.f32.mrb[11].mxu0  ;;  %2162 = vmatpush3.bf16.msra.mxu1 %v2159_v42  ;;  %v2873_v42 = vstv %s2757_s6  ;;  %s3605_s6 = sld [smem:[#allocation15_spill]] }
 0x14f   : > { %v2163_v45 = vpack.c.bf16 %v2061_v43, %v660_v44  ;;  %3554 = vst [vmem:[#allocation32_spill] sm:$0xff] %v2873_v42  ;;  %v2876_v43 = vstv %s2759_s7  ;;  %v2879_v44 = vstv %s2773_s12 }
 0x150   : > { %3555 = vst [vmem:[#allocation33_spill] sm:$0xff] %v2876_v43  ;;  %3556 = vst [vmem:[#allocation34_spill] sm:$0xff] %v2879_v44 }
 0x151   : > { %2164 = vmatprep.subr.bf16.mxu1 %v2163_v45  ;;  %v2064_v46 = vpop.f32.mrb[12].mxu0 }
 0x152   : > { %2166 = vmatpush3.bf16.msra.mxu1 %v2163_v45  ;;  %v670_v48 = vpop.f32.mrb[13].mxu0 }
 0x153   : > { %2168 = vmatprep.subr.bf16.mxu1 %v2167_v29  ;;  %v2175_v49 = vpack.c.bf16 %v2064_v46, %v670_v48  ;;  %v2882_v46 = vstv %s2775_s30 }
 0x154   : > { %3557 = vst [vmem:[#allocation35_spill] sm:$0xff] %v2882_v46  ;;  %s1952_s21 = sshll.u32 %s3605_s6, 12 }
 0x155   : > { %2084 = vmatmul.mubr.msk.f32.vlgmr.msra.gmra.mrb[6].mxu1 %vm705_vm1, %v700_v47  ;;  %v2067_v51 = vpop.f32.mrb[14].mxu0  ;;  %v2885_v47 = vstv %s2789_s8  ;;  %s3407_s7 = scalar_lea.hbm %s3609_s26, %s1952_s21 }
 0x156   : > { %2170 = vmatpush3.bf16.msra.mxu1 %v2167_v29  ;;  %2086 = vmatprep.mubr.msk.f32.mxu1 %vm705_vm1, %v701_v50  ;;  %v680_v53 = vpop.f32.mrb[15].mxu0  ;;  %v2844_v29 = vstv %s3545_s16  ;;  %3558 = vst [vmem:[#allocation36_spill] sm:$0xff] %v2885_v47  ;;  %v2888_v50 = vstv %s2791_s13 }
 0x157   : > { %2172 = vmatprep.subr.bf16.mxu1 %v2171_v24  ;;  %v2187_v54 = vpack.c.bf16 %v2067_v51, %v680_v53  ;;  %3559 = vst [vmem:[#allocation37_spill] sm:$0xff] %v2888_v50  ;;  %v2891_v51 = vstv %s2805_s15 }
 0x158   : > { %3560 = vst [vmem:[#allocation38_spill] sm:$0xff] %v2891_v51 }
 0x159   : > { %2087 = vmatmul.mubr.msk.f32.gmra.mrb[8].mxu1 %vm705_vm1, %v702_v52  ;;  %2188 = vmatprep.subr.bf16.mxu0 %v2187_v54  ;;  %v2070_v56 = vpop.f32.mrb[16].mxu0  ;;  %v2894_v52 = vstv %s2807_s17 }
 0x15a   : > { %2174 = vmatpush3.bf16.msra.mxu1 %v2171_v24  ;;  %2101 = vmatprep.mubr.msk.f32.mxu1 %vm705_vm1, %v1853_v55  ;;  %v690_v57 = vpop.f32.mrb[17].mxu0  ;;  %v2827_v24 = vstv %s2723_s5  ;;  %3561 = vst [vmem:[#allocation39_spill] sm:$0xff] %v2894_v52  ;;  %s3263_s5 = scalar_lea.vmem [#allocation8], %s1818_s4 }
 0x15b   : > { %2176 = vmatprep.subr.bf16.mxu1 %v2175_v49  ;;  %2190 = vmatpush3.bf16.msra.mxu0 %v2187_v54  ;;  %v2199_v59 = vpack.c.bf16 %v2070_v56, %v690_v57  ;;  %v2898_v56 = vstv %s2821_s19  ;;  %s1684_s22 = sshll.u32 %s3263_s5, 4  ;;  %s3409_s22 = int_to_ptr.vmem [resolvable:$true] %s1684_s22 }
 0x15c   : > { %3562 = vst [vmem:[#allocation40_spill] sm:$0xff] %v2898_v56  ;;  %s2338_s10 = scalar_lea.vmem %s3409_s22, 4096  ;;  %p2345_p3 = scmp.lt.s32.totalorder %s3409_s22, %s2343_s27 }
 0x15d   : > { %p2339_p13 = scmp.ne.s32.totalorder %s3409_s22, %s2338_s10  ;;  %p2346_p5 = scmp.lt.s32.totalorder %s2344_s28, %s2338_s10 }
 0x15e   : > { %2178 = vmatpush3.bf16.msra.mxu1 %v2175_v49  ;;  %2120 = vmatmul.mubr.msk.f32.vlgmr.msra.gmra.mrb[18].mxu0 %vm705_vm1, %v1863_v58 }
 0x15f   : > { %2192 = vmatprep.subr.bf16.mxu1 %v2191_v39  ;;  %2122 = vmatprep.mubr.msk.f32.mxu0 %vm705_vm1, %v1864_v60  ;;  %v2910_v60 = vstv %s2835_s0  ;;  %p2347_p6 = por %p2346_p5, %p2345_p3 }
 0x160   : > { %3563 = vst [vmem:[#allocation41_spill] sm:$0xff] %v2910_v60 }
 0x161   : > { %2102 = vmatmul.mubr.msk.f32.vlgmr.msra.gmra.mrb[10].mxu1 %vm705_vm1, %v1854_v61 }
 0x162   : > { %2194 = vmatpush3.bf16.msra.mxu1 %v2191_v39  ;;  %2104 = vmatprep.mubr.msk.f32.mxu1 %vm705_vm1, %v1855_v62  ;;  %v2866_v39 = vstv %s2747_s23  ;;  %s3608_s23 = sld [smem:[#allocation19_spill]] }
 0x163   : > { %2196 = vmatprep.subr.bf16.mxu1 %v2195_v36  ;;  %2123 = vmatmul.mubr.msk.f32.gmra.mrb[20].mxu0 %vm705_vm1, %v1865_v63  ;;  %3552 = vst [vmem:[#allocation30_spill] sm:$0xff] %v2866_v39 }
 0x165   : > { %2105 = vmatmul.mubr.msk.f32.gmra.mrb[12].mxu1 %vm705_vm1, %v1856_v0 }
 0x166   : > { %2198 = vmatpush3.bf16.msra.mxu1 %v2195_v36  ;;  %2137 = vmatprep.mubr.msk.f32.mxu1 %vm705_vm1, %v1871_v1 }
 0x167   : > { %2200 = vmatprep.subr.bf16.mxu1 %v2199_v59 }
 0x168   : > { %p3611_p1 = scmp.ne.s32.totalorder %s3608_s23, 0 }
 0x16a   : > { %2202 = vmatpush3.bf16.msra.mxu1 %v2199_v59  ;;  %p2340_p0 = pnand %p2339_p13, %p3611_p1 }
 0x16c   : > { %p2341_p2 = pneg %p2340_p0 }
 0x16d   : > { %2138 = vmatmul.mubr.msk.f32.vlgmr.msra.gmra.mrb[14].mxu1 %vm705_vm1, %v1872_v2 }
 0x16e   : > { %2140 = vmatprep.mubr.msk.f32.mxu1 %vm705_vm1, %v1873_v3  ;;  %p2348_p7 = pnand %p2347_p6, %p2341_p2 }
 0x171   : > { %2141 = vmatmul.mubr.msk.f32.gmra.mrb[16].mxu1 %vm705_vm1, %v1874_v4 }
 0x228   : > { %v2085_v31 = vpop.f32.mrb[6].mxu1 }
 0x229   : > { %v790_v36 = vadd.f32 %v2085_v31, %v2752_v5  ;;  %v784_v37 = vpop.f32.mrb[7].mxu1 }
 0x22a   : > { %v785_v41 = vadd.f32 %v784_v37, %v2752_v5 }
 0x22b   : > { %vm804_vm2 = vcmp.gt.f32.partialorder %v790_v36, 0.0  ;;  %v808_v45 = vmul.f32 0.01, %v790_v36 }
 0x22c   : > { %v807_v48 = vmul.f32 0.01, %v785_v41  ;;  %v2088_v49 = vpop.f32.mrb[8].mxu1  ;;  %vm803_vm3 = vcmp.gt.f32.partialorder %v785_v41, 0.0 }
 0x22d   : > { %v812_v53 = vsel %vm804_vm2, %v790_v36, %v808_v45  ;;  %v800_v54 = vadd.f32 %v2088_v49, %v2752_v5  ;;  %v794_v55 = vpop.f32.mrb[9].mxu1 }
 0x22e   : > { %v2901_v57 = vmul.f32 %v2755_v6, %v812_v53  ;;  %v2904_v58 = vmul.f32 %v2762_v7, %v812_v53  ;;  %v2907_v59 = vmul.f32 %v2765_v8, %v812_v53  ;;  %v2913_v61 = vmul.f32 %v2768_v9, %v812_v53 }
 0x22f   : > { %v2916_v62 = vmul.f32 %v2771_v10, %v812_v53  ;;  %v2919_v63 = vmul.f32 %v2778_v11, %v812_v53  ;;  %v2922_v0 = vmul.f32 %v2781_v12, %v812_v53  ;;  %v811_v1 = vsel %vm803_vm3, %v785_v41, %v807_v48 }
 0x230   : > { %vm806_vm4 = vcmp.gt.f32.partialorder %v800_v54, 0.0  ;;  %v810_v2 = vmul.f32 0.01, %v800_v54  ;;  %v795_v3 = vadd.f32 %v794_v55, %v2752_v5  ;;  %v2926_v4 = vmul.f32 %v2784_v13, %v812_v53 }
 0x231   : > { %v2929_v31 = vmul.f32 %v2755_v6, %v811_v1  ;;  %v2932_v36 = vmul.f32 %v2762_v7, %v811_v1  ;;  %v2935_v37 = vmul.f32 %v2765_v8, %v811_v1  ;;  %v2121_v45 = vpop.f32.mrb[18].mxu0  ;;  %v2938_v49 = vmul.f32 %v2768_v9, %v811_v1 }
 0x232   : > { %v2941_v41 = vmul.f32 %v2771_v10, %v811_v1  ;;  %v2944_v5 = vmul.f32 %v2778_v11, %v811_v1  ;;  %v2947_v48 = vmul.f32 %v2781_v12, %v811_v1  ;;  %v1018_v53 = vpop.f32.mrb[19].mxu0  ;;  %v2950_v55 = vmul.f32 %v2784_v13, %v811_v1 }
 0x233   : > { %v814_v60 = vsel %vm806_vm4, %v800_v54, %v810_v2  ;;  %vm805_vm5 = vcmp.gt.f32.partialorder %v795_v3, 0.0  ;;  %v809_v56 = vmul.f32 0.01, %v795_v3  ;;  %v2962_v46 = vadd.f32 %v2121_v45, %v2824_v23 }
 0x234   : > { %v2953_v52 = vmul.f32 %v2755_v6, %v814_v60  ;;  %v2956_v51 = vmul.f32 %v2762_v7, %v814_v60  ;;  %v2959_v50 = vmul.f32 %v2765_v8, %v814_v60  ;;  %v2103_v47 = vpop.f32.mrb[10].mxu1  ;;  %v2965_v44 = vmul.f32 %v2768_v9, %v814_v60 }
 0x235   : > { %v2968_v54 = vmul.f32 %v2771_v10, %v814_v60  ;;  %v2971_v1 = vmul.f32 %v2778_v11, %v814_v60  ;;  %v2974_v2 = vmul.f32 %v2781_v12, %v814_v60  ;;  %v901_v43 = vpop.f32.mrb[11].mxu1  ;;  %v2977_v42 = vmul.f32 %v2784_v13, %v814_v60 }
 0x236   : > { %v813_v40 = vsel %vm805_vm5, %v795_v3, %v809_v56  ;;  %v907_v45 = vadd.f32 %v2103_v47, %v2787_v14  ;;  %v902_v39 = vadd.f32 %v901_v43, %v2787_v14  ;;  %v2124_v38 = vpop.f32.mrb[20].mxu0  ;;  %vm1038_vm8 = vcmp.gt.f32.partialorder %v2962_v46, 0.0 }
 0x237   : > { %3564 = vst [vmem:[#allocation42_spill] sm:$0xff] %v2974_v2  ;;  %v2982_v35 = vmul.f32 %v2755_v6, %v813_v40  ;;  %v2985_v34 = vmul.f32 %v2762_v7, %v813_v40  ;;  %v2988_v33 = vmul.f32 %v2765_v8, %v813_v40  ;;  %v2991_v2 = vmul.f32 %v2768_v9, %v813_v40  ;;  %v1028_v60 = vpop.f32.mrb[21].mxu0 }
 0x238   : > { %v2994_v56 = vmul.f32 %v2771_v10, %v813_v40  ;;  %v2997_v47 = vmul.f32 %v2778_v11, %v813_v40  ;;  %v3000_v43 = vmul.f32 %v2781_v12, %v813_v40  ;;  %v3003_v6 = vmul.f32 %v2784_v13, %v813_v40  ;;  %v2106_v7 = vpop.f32.mrb[12].mxu1 }
 0x239   : > { %3565 = vst [vmem:[#allocation43_spill] sm:$0xff] %v2982_v35  ;;  %3566 = vst [vmem:[#allocation44_spill] sm:$0xff] %v2985_v34  ;;  %vm921_vm6 = vcmp.gt.f32.partialorder %v907_v45, 0.0  ;;  %v925_v8 = vmul.f32 0.01, %v907_v45  ;;  %vm920_vm7 = vcmp.gt.f32.partialorder %v902_v39, 0.0  ;;  %v3008_v10 = vadd.f32 %v1018_v53, %v2824_v23 }
 0x23a   : > { %3567 = vst [vmem:[#allocation45_spill] sm:$0xff] %v2988_v33  ;;  %3568 = vst [vmem:[#allocation46_spill] sm:$0xff] %v2991_v2  ;;  %v924_v3 = vmul.f32 0.01, %v902_v39  ;;  %v1042_v9 = vmul.f32 0.01, %v2962_v46  ;;  %v3011_v11 = vadd.f32 %v2106_v7, %v2787_v14 }
 0x23b   : > { %3569 = vst [vmem:[#allocation47_spill] sm:$0xff] %v2994_v56  ;;  %3570 = vst [vmem:[#allocation48_spill] sm:$0xff] %v2997_v47  ;;  %v911_v12 = vpop.f32.mrb[13].mxu1  ;;  %v929_v13 = vsel %vm921_vm6, %v907_v45, %v925_v8  ;;  %v3020_v47 = vadd.f32 %v1028_v60, %v2824_v23  ;;  %vm1037_vm9 = vcmp.gt.f32.partialorder %v3008_v10, 0.0 }
 0x23c   : > { %3571 = vst [vmem:[#allocation49_spill] sm:$0xff] %v3000_v43  ;;  %3572 = vst [vmem:[#allocation50_spill] sm:$0xff] %v3003_v6  ;;  %v3014_v43 = vadd.f32 %v2124_v38, %v2824_v23  ;;  %v928_v40 = vsel %vm920_vm7, %v902_v39, %v924_v3  ;;  %v3017_v6 = vadd.f32 %v911_v12, %v2787_v14  ;;  %vm923_vm10 = vcmp.gt.f32.partialorder %v3011_v11, 0.0 }
 0x23d   : > { %3573 = vst [vmem:[#allocation51_spill] sm:$0xff] %v3020_v47  ;;  %v1177_v56 = vmul.f32 %v2794_v15, %v929_v13  ;;  %v1217_v53 = vmul.f32 %v2797_v16, %v929_v13  ;;  %v1257_v2 = vmul.f32 %v2800_v17, %v929_v13  ;;  %v1297_v7 = vmul.f32 %v2803_v18, %v929_v13 }
 0x23e   : > { %v1337_v33 = vmul.f32 %v2810_v19, %v929_v13  ;;  %v1377_v38 = vmul.f32 %v2813_v20, %v929_v13  ;;  %v1417_v39 = vmul.f32 %v2816_v21, %v929_v13  ;;  %v1457_v14 = vmul.f32 %v2819_v22, %v929_v13 }
 0x23f   : > { %v1181_v45 = vadd.f32 %v1177_v56, %v2901_v57  ;;  %v1221_v23 = vadd.f32 %v1217_v53, %v2904_v58  ;;  %v1261_v60 = vadd.f32 %v1257_v2, %v2907_v59  ;;  %v1301_v8 = vadd.f32 %v1297_v7, %v2913_v61 }
 0x240   : > { %v1341_v3 = vadd.f32 %v1337_v33, %v2916_v62  ;;  %v1381_v12 = vadd.f32 %v1377_v38, %v2919_v63  ;;  %v1421_v47 = vadd.f32 %v1417_v39, %v2922_v0  ;;  %v1461_v34 = vadd.f32 %v1457_v14, %v2926_v4  ;;  %v3042_v56 = vpop.f32.mrb[14].mxu1 }
 0x241   : > { %v1176_v35 = vmul.f32 %v2794_v15, %v928_v40  ;;  %v1216_v13 = vmul.f32 %v2797_v16, %v928_v40  ;;  %v1256_v57 = vmul.f32 %v2800_v17, %v928_v40  ;;  %v1296_v58 = vmul.f32 %v2803_v18, %v928_v40  ;;  %v3048_v63 = vpop.f32.mrb[15].mxu1 }
 0x242   : > { %v1336_v59 = vmul.f32 %v2810_v19, %v928_v40  ;;  %v1376_v33 = vmul.f32 %v2813_v20, %v928_v40  ;;  %v1416_v61 = vmul.f32 %v2816_v21, %v928_v40  ;;  %v1456_v62 = vmul.f32 %v2819_v22, %v928_v40 }
 0x243   : > { %v1180_v0 = vadd.f32 %v1176_v35, %v2929_v31  ;;  %v1220_v4 = vadd.f32 %v1216_v13, %v2932_v36  ;;  %v1260_v2 = vadd.f32 %v1256_v57, %v2935_v37  ;;  %v1300_v53 = vadd.f32 %v1296_v58, %v2938_v49 }
 0x244   : > { %v1340_v7 = vadd.f32 %v1336_v59, %v2941_v41  ;;  %v1380_v38 = vadd.f32 %v1376_v33, %v2944_v5  ;;  %v1420_v39 = vadd.f32 %v1416_v61, %v2947_v48  ;;  %v1460_v14 = vadd.f32 %v1456_v62, %v2950_v55  ;;  %v3064_v31 = vpop.f32.mrb[16].mxu1 }
 0x245   : > { %v1046_v40 = vsel %vm1038_vm8, %v2962_v46, %v1042_v9  ;;  %v1041_v35 = vmul.f32 0.01, %v3008_v10  ;;  %v3070_v5 = vpop.f32.mrb[17].mxu1  ;;  %vm922_vm11 = vcmp.gt.f32.partialorder %v3017_v6, 0.0  ;;  %vm1040_vm12 = vcmp.gt.f32.partialorder %v3014_v43, 0.0 }
 0x246   : > { %v1188_v36 = vmul.f32 %v2827_v24, %v1046_v40  ;;  %v1228_v37 = vmul.f32 %v2830_v25, %v1046_v40  ;;  %v1268_v49 = vmul.f32 %v2833_v26, %v1046_v40  ;;  %v1308_v41 = vmul.f32 %v2838_v27, %v1046_v40  ;;  %3574 = vst [vmem:[#allocation52_spill] sm:$0xff] %v3070_v5 }
 0x247   : > { %v1348_v46 = vmul.f32 %v2841_v28, %v1046_v40  ;;  %v1388_v48 = vmul.f32 %v2844_v29, %v1046_v40  ;;  %v1428_v55 = vmul.f32 %v2847_v30, %v1046_v40  ;;  %v1468_v9 = vmul.f32 %v2850_v32, %v1046_v40 }
 0x248   : > { %v3076_v13 = vadd.f32 %v1188_v36, %v1181_v45  ;;  %v3078_v57 = vadd.f32 %v1228_v37, %v1221_v23  ;;  %v3080_v58 = vadd.f32 %v1268_v49, %v1261_v60  ;;  %v3082_v59 = vadd.f32 %v1308_v41, %v1301_v8 }
 0x249   : > { %v3084_v33 = vadd.f32 %v1348_v46, %v1341_v3  ;;  %v3086_v61 = vadd.f32 %v1388_v48, %v1381_v12  ;;  %v3088_v62 = vadd.f32 %v1428_v55, %v1421_v47  ;;  %v3090_v5 = vadd.f32 %v1468_v9, %v1461_v34 }
 0x24a   : > { %v1045_v40 = vsel %vm1037_vm9, %v3008_v10, %v1041_v35  ;;  %v927_v45 = vmul.f32 0.01, %v3011_v11  ;;  %v926_v23 = vmul.f32 0.01, %v3017_v6 }
 0x24b   : > { %v1187_v60 = vmul.f32 %v2827_v24, %v1045_v40  ;;  %v1227_v8 = vmul.f32 %v2830_v25, %v1045_v40  ;;  %v1267_v3 = vmul.f32 %v2833_v26, %v1045_v40  ;;  %v1307_v47 = vmul.f32 %v2838_v27, %v1045_v40 }
 0x24c   : > { %v1347_v34 = vmul.f32 %v2841_v28, %v1045_v40  ;;  %v1387_v12 = vmul.f32 %v2844_v29, %v1045_v40  ;;  %v1427_v10 = vmul.f32 %v2847_v30, %v1045_v40  ;;  %v1467_v35 = vmul.f32 %v2850_v32, %v1045_v40 }
 0x24d   : > { %v3106_v36 = vadd.f32 %v1187_v60, %v1180_v0  ;;  %v3108_v37 = vadd.f32 %v1227_v8, %v1220_v4  ;;  %v3110_v49 = vadd.f32 %v1267_v3, %v1260_v2  ;;  %v3112_v41 = vadd.f32 %v1307_v47, %v1300_v53 }
 0x24e   : > { %v3114_v46 = vadd.f32 %v1347_v34, %v1340_v7  ;;  %v3116_v48 = vadd.f32 %v1387_v12, %v1380_v38  ;;  %v3118_v55 = vadd.f32 %v1427_v10, %v1420_v39  ;;  %v3120_v9 = vadd.f32 %v1467_v35, %v1460_v14  ;;  %v3575_v34 = vld [vmem:[#allocation42_spill] sm:$0xff] }
 0x24f   : > { %v931_v40 = vsel %vm923_vm10, %v3011_v11, %v927_v45  ;;  %v930_v0 = vsel %vm922_vm11, %v3017_v6, %v926_v23  ;;  %v1044_v4 = vmul.f32 0.01, %v3014_v43 }
 0x250   : > { %v1179_v2 = vmul.f32 %v2794_v15, %v931_v40  ;;  %v1219_v53 = vmul.f32 %v2797_v16, %v931_v40  ;;  %v1259_v7 = vmul.f32 %v2800_v17, %v931_v40  ;;  %v1299_v38 = vmul.f32 %v2803_v18, %v931_v40 }
 0x251   : > { %v1339_v39 = vmul.f32 %v2810_v19, %v931_v40  ;;  %v1379_v11 = vmul.f32 %v2813_v20, %v931_v40  ;;  %v1419_v14 = vmul.f32 %v2816_v21, %v931_v40  ;;  %v1459_v6 = vmul.f32 %v2819_v22, %v931_v40 }
 0x252   : > { %v1183_v45 = vadd.f32 %v1179_v2, %v2953_v52  ;;  %v1223_v23 = vadd.f32 %v1219_v53, %v2956_v51  ;;  %v1263_v60 = vadd.f32 %v1259_v7, %v2959_v50  ;;  %v1303_v8 = vadd.f32 %v1299_v38, %v2965_v44  ;;  %v3576_v2 = vld [vmem:[#allocation43_spill] sm:$0xff]  ;;  %v3577_v7 = vld [vmem:[#allocation44_spill] sm:$0xff]  ;;  %v3578_v38 = vld [vmem:[#allocation45_spill] sm:$0xff] }
 0x253   : > { %v1343_v3 = vadd.f32 %v1339_v39, %v2968_v54  ;;  %v1383_v47 = vadd.f32 %v1379_v11, %v2971_v1  ;;  %v1423_v12 = vadd.f32 %v1419_v14, %v3575_v34  ;;  %v1463_v10 = vadd.f32 %v1459_v6, %v2977_v42  ;;  %v3579_v39 = vld [vmem:[#allocation46_spill] sm:$0xff]  ;;  %v3580_v11 = vld [vmem:[#allocation47_spill] sm:$0xff]  ;;  %v3581_v14 = vld [vmem:[#allocation48_spill] sm:$0xff] }
 0x254   : > { %v1178_v35 = vmul.f32 %v2794_v15, %v930_v0  ;;  %v1218_v40 = vmul.f32 %v2797_v16, %v930_v0  ;;  %v1258_v52 = vmul.f32 %v2800_v17, %v930_v0  ;;  %v1298_v51 = vmul.f32 %v2803_v18, %v930_v0  ;;  %v3582_v6 = vld [vmem:[#allocation49_spill] sm:$0xff]  ;;  %v3583_v34 = vld [vmem:[#allocation50_spill] sm:$0xff] }
 0x255   : > { %v1338_v50 = vmul.f32 %v2810_v19, %v930_v0  ;;  %v1378_v44 = vmul.f32 %v2813_v20, %v930_v0  ;;  %v1418_v54 = vmul.f32 %v2816_v21, %v930_v0  ;;  %v1458_v1 = vmul.f32 %v2819_v22, %v930_v0  ;;  %v3584_v22 = vld [vmem:[#allocation51_spill] sm:$0xff] }
 0x256   : > { %v1182_v53 = vadd.f32 %v1178_v35, %v3576_v2  ;;  %v1222_v42 = vadd.f32 %v1218_v40, %v3577_v7  ;;  %v1262_v15 = vadd.f32 %v1258_v52, %v3578_v38  ;;  %v1302_v16 = vadd.f32 %v1298_v51, %v3579_v39  ;;  %v3585_v35 = vld [vmem:[#allocation26_spill] sm:$0xff] }
 0x257   : > { %v1342_v17 = vadd.f32 %v1338_v50, %v3580_v11  ;;  %v1382_v18 = vadd.f32 %v1378_v44, %v3581_v14  ;;  %v1422_v19 = vadd.f32 %v1418_v54, %v3582_v6  ;;  %v1462_v20 = vadd.f32 %v1458_v1, %v3583_v34 }
 0x258   : > { %v1048_v21 = vsel %vm1040_vm12, %v3014_v43, %v1044_v4  ;;  %vm1039_vm13 = vcmp.gt.f32.partialorder %v3584_v22, 0.0  ;;  %v1043_v0 = vmul.f32 0.01, %v3584_v22  ;;  %v1141_v40 = vadd.f32 %v3042_v56, %v3585_v35 }
 0x259   : > { %v1190_v52 = vmul.f32 %v2827_v24, %v1048_v21  ;;  %v1230_v51 = vmul.f32 %v2830_v25, %v1048_v21  ;;  %v1270_v50 = vmul.f32 %v2833_v26, %v1048_v21  ;;  %v1310_v44 = vmul.f32 %v2838_v27, %v1048_v21 }
 0x25a   : > { %v1350_v54 = vmul.f32 %v2841_v28, %v1048_v21  ;;  %v1390_v1 = vmul.f32 %v2844_v29, %v1048_v21  ;;  %v1430_v43 = vmul.f32 %v2847_v30, %v1048_v21  ;;  %v1470_v4 = vmul.f32 %v2850_v32, %v1048_v21 }
 0x25b   : > { %v3179_v2 = vadd.f32 %v1190_v52, %v1183_v45  ;;  %v3181_v56 = vadd.f32 %v1230_v51, %v1223_v23  ;;  %v3183_v7 = vadd.f32 %v1270_v50, %v1263_v60  ;;  %v3185_v38 = vadd.f32 %v1310_v44, %v1303_v8  ;;  %v3593_v50 = vld [vmem:[#allocation31_spill] sm:$0xff]  ;;  %v3594_v44 = vld [vmem:[#allocation32_spill] sm:$0xff] }
 0x25c   : > { %v3187_v39 = vadd.f32 %v1350_v54, %v1343_v3  ;;  %v3189_v11 = vadd.f32 %v1390_v1, %v1383_v47  ;;  %v3191_v14 = vadd.f32 %v1430_v43, %v1423_v12  ;;  %v3193_v6 = vadd.f32 %v1470_v4, %v1463_v10  ;;  %v3595_v1 = vld [vmem:[#allocation33_spill] sm:$0xff]  ;;  %v3596_v4 = vld [vmem:[#allocation34_spill] sm:$0xff] }
 0x25d   : > { %v1047_v34 = vsel %vm1039_vm13, %v3584_v22, %v1043_v0  ;;  %vm1155_vm14 = vcmp.gt.f32.partialorder %v1141_v40, 0.0  ;;  %v1159_v45 = vmul.f32 0.01, %v1141_v40  ;;  %v3200_v23 = vadd.f32 %v3048_v63, %v3585_v35 }
 0x25e   : > { %v1189_v60 = vmul.f32 %v2827_v24, %v1047_v34  ;;  %v1229_v8 = vmul.f32 %v2830_v25, %v1047_v34  ;;  %v1269_v3 = vmul.f32 %v2833_v26, %v1047_v34  ;;  %v1309_v47 = vmul.f32 %v2838_v27, %v1047_v34 }
 0x25f   : > { %v1349_v12 = vmul.f32 %v2841_v28, %v1047_v34  ;;  %v1389_v10 = vmul.f32 %v2844_v29, %v1047_v34  ;;  %v1429_v21 = vmul.f32 %v2847_v30, %v1047_v34  ;;  %v1469_v22 = vmul.f32 %v2850_v32, %v1047_v34 }
 0x260   : > { %v3210_v63 = vadd.f32 %v1189_v60, %v1182_v53  ;;  %v3212_v0 = vadd.f32 %v1229_v8, %v1222_v42  ;;  %v3214_v24 = vadd.f32 %v1269_v3, %v1262_v15  ;;  %v3216_v25 = vadd.f32 %v1309_v47, %v1302_v16  ;;  %v3589_v42 = vld [vmem:[#allocation27_spill] sm:$0xff]  ;;  %v3590_v16 = vld [vmem:[#allocation28_spill] sm:$0xff] }
 0x261   : > { %v3218_v26 = vadd.f32 %v1349_v12, %v1342_v17  ;;  %v3220_v27 = vadd.f32 %v1389_v10, %v1382_v18  ;;  %v3222_v52 = vadd.f32 %v1429_v21, %v1422_v19  ;;  %v3224_v28 = vadd.f32 %v1469_v22, %v1462_v20  ;;  %v3591_v18 = vld [vmem:[#allocation29_spill] sm:$0xff]  ;;  %v3592_v20 = vld [vmem:[#allocation30_spill] sm:$0xff]  ;;  %v3597_v21 = vld [vmem:[#allocation35_spill] sm:$0xff] }
 0x262   : > { %v1163_v29 = vsel %vm1155_vm14, %v1141_v40, %v1159_v45  ;;  %v3229_v30 = vstv %s3177_s1  ;;  %v1158_v32 = vmul.f32 0.01, %v3200_v23  ;;  %v3234_v53 = vadd.f32 %v3064_v31, %v3585_v35 }
 0x263   : > { %3587 = vst [vmem:[#allocation42_spill] sm:$0xff] %v3222_v52  ;;  %3588 = vst [vmem:[#allocation43_spill] sm:$0xff] %v3224_v28  ;;  %v1199_v15 = vmul.f32 %v3589_v42, %v1163_v29  ;;  %v1239_v17 = vmul.f32 %v3590_v16, %v1163_v29  ;;  %v1279_v19 = vmul.f32 %v3591_v18, %v1163_v29  ;;  %vm1154_vm0 = vcmp.gt.f32.partialorder %v3200_v23, 0.0  ;;  %v3599_v52 = vld [vmem:[#allocation37_spill] sm:$0xff] }
 0x264   : > { %v1319_v51 = vmul.f32 %v3592_v20, %v1163_v29  ;;  %v1359_v40 = vmul.f32 %v3593_v50, %v1163_v29  ;;  %v1399_v54 = vmul.f32 %v3594_v44, %v1163_v29  ;;  %v1439_v43 = vmul.f32 %v3595_v1, %v1163_v29 }
 0x265   : > { %v1479_v34 = vmul.f32 %v3596_v4, %v1163_v29  ;;  %v1203_v31 = vadd.f32 %v1199_v15, %v3076_v13  ;;  %v1243_v45 = vadd.f32 %v1239_v17, %v3078_v57  ;;  %v1283_v60 = vadd.f32 %v1279_v19, %v3080_v58  ;;  %v3598_v29 = vld [vmem:[#allocation36_spill] sm:$0xff]  ;;  %v3600_v15 = vld [vmem:[#allocation38_spill] sm:$0xff]  ;;  %v3601_v17 = vld [vmem:[#allocation39_spill] sm:$0xff] }
 0x266   : > { %v1323_v8 = vadd.f32 %v1319_v51, %v3082_v59  ;;  %v1363_v3 = vadd.f32 %v1359_v40, %v3084_v33  ;;  %v1403_v47 = vadd.f32 %v1399_v54, %v3086_v61  ;;  %v1443_v12 = vadd.f32 %v1439_v43, %v3088_v62  ;;  %v3602_v19 = vld [vmem:[#allocation40_spill] sm:$0xff]  ;;  %v3603_v51 = vld [vmem:[#allocation41_spill] sm:$0xff] }
 0x267   : > { %v1483_v10 = vadd.f32 %v1479_v34, %v3090_v5  ;;  %v1489_v22 = vadd.f32 %v3597_v21, %v1203_v31  ;;  %v1512_v28 = vadd.f32 %v3598_v29, %v1243_v45  ;;  %v1535_v13 = vadd.f32 %v3599_v52, %v1283_v60 }
 0x268   : > { %v1558_v57 = vadd.f32 %v3600_v15, %v1323_v8  ;;  %v1581_v58 = vadd.f32 %v3601_v17, %v1363_v3  ;;  %v1604_v59 = vadd.f32 %v3602_v19, %v1403_v47  ;;  %v1627_v33 = vadd.f32 %v3603_v51, %v1443_v12 }
 0x269   : > { %v1650_v61 = vadd.f32 %v3229_v30, %v1483_v10  ;;  %vm1493_vm1 = vcmp.gt.f32.partialorder %v1489_v22, 0.0  ;;  %v1497_v62 = vmul.f32 0.01, %v1489_v22  ;;  %vm1516_vm2 = vcmp.gt.f32.partialorder %v1512_v28, 0.0 }
 0x26a   : > { %v1520_v5 = vmul.f32 0.01, %v1512_v28  ;;  %vm1539_vm3 = vcmp.gt.f32.partialorder %v1535_v13, 0.0  ;;  %v1543_v40 = vmul.f32 0.01, %v1535_v13  ;;  %vm1562_vm4 = vcmp.gt.f32.partialorder %v1558_v57, 0.0 }
 0x26b   : > { %v1566_v54 = vmul.f32 0.01, %v1558_v57  ;;  %v1501_v43 = vsel %vm1493_vm1, %v1489_v22, %v1497_v62  ;;  %vm1585_vm5 = vcmp.gt.f32.partialorder %v1581_v58, 0.0  ;;  %v1589_v31 = vmul.f32 0.01, %v1581_v58 }
 0x26c   : > { %v1524_v34 = vsel %vm1516_vm2, %v1512_v28, %v1520_v5  ;;  %1506 = vst.msk [vmem:[%s3263_s5 + $0x8] sm:$0xff] %vm1504_vm15, %v1501_v43  ;;  %v1547_v45 = vsel %vm1539_vm3, %v1535_v13, %v1543_v40  ;;  %vm1608_vm6 = vcmp.gt.f32.partialorder %v1604_v59, 0.0  ;;  %v1612_v8 = vmul.f32 0.01, %v1604_v59 }
 0x26d   : > { %1913 = vst.msk [vmem:[%s3263_s5 + $0x28] sm:$0xff] %vm1504_vm15, %v1524_v34  ;;  %v1570_v60 = vsel %vm1562_vm4, %v1558_v57, %v1566_v54  ;;  %1918 = vst.msk [vmem:[%s3263_s5 + $0x48] sm:$0xff] %vm1504_vm15, %v1547_v45  ;;  %v1593_v28 = vsel %vm1585_vm5, %v1581_v58, %v1589_v31  ;;  %vm1631_vm7 = vcmp.gt.f32.partialorder %v1627_v33, 0.0  ;;  %v1635_v3 = vmul.f32 0.01, %v1627_v33 }
 0x26e   : > { %1923 = vst.msk [vmem:[%s3263_s5 + $0x68] sm:$0xff] %vm1504_vm15, %v1570_v60  ;;  %vm1654_vm8 = vcmp.gt.f32.partialorder %v1650_v61, 0.0  ;;  %1928 = vst.msk [vmem:[%s3263_s5 + $0x88] sm:$0xff] %vm1504_vm15, %v1593_v28  ;;  %v1616_v47 = vsel %vm1608_vm6, %v1604_v59, %v1612_v8  ;;  %v1658_v12 = vmul.f32 0.01, %v1650_v61  ;;  %v1162_v10 = vsel %vm1154_vm0, %v3200_v23, %v1158_v32 }
 0x26f   : > { %1933 = vst.msk [vmem:[%s3263_s5 + $0xa8] sm:$0xff] %vm1504_vm15, %v1616_v47  ;;  %v1639_v22 = vsel %vm1631_vm7, %v1627_v33, %v1635_v3  ;;  %v1198_v13 = vmul.f32 %v3589_v42, %v1162_v10  ;;  %v1238_v57 = vmul.f32 %v3590_v16, %v1162_v10  ;;  %v1278_v58 = vmul.f32 %v3591_v18, %v1162_v10 }
 0x270   : > { %1938 = vst.msk [vmem:[%s3263_s5 + $0xc8] sm:$0xff] %vm1504_vm15, %v1639_v22  ;;  %v1662_v62 = vsel %vm1654_vm8, %v1650_v61, %v1658_v12  ;;  %v1318_v5 = vmul.f32 %v3592_v20, %v1162_v10  ;;  %v1358_v59 = vmul.f32 %v3593_v50, %v1162_v10  ;;  %v1398_v40 = vmul.f32 %v3594_v44, %v1162_v10 }
 0x271   : > { %1943 = vst.msk [vmem:[%s3263_s5 + $0xe8] sm:$0xff] %vm1504_vm15, %v1662_v62  ;;  %v1202_v23 = vadd.f32 %v1198_v13, %v3106_v36  ;;  %v1242_v32 = vadd.f32 %v1238_v57, %v3108_v37  ;;  %v1282_v33 = vadd.f32 %v1278_v58, %v3110_v49  ;;  %v1438_v54 = vmul.f32 %v3595_v1, %v1162_v10 }
 0x272   : > { %vm1157_vm9 = vcmp.gt.f32.partialorder %v3234_v53, 0.0  ;;  %v1322_v61 = vadd.f32 %v1318_v5, %v3112_v41  ;;  %v1362_v43 = vadd.f32 %v1358_v59, %v3114_v46  ;;  %v1402_v34 = vadd.f32 %v1398_v40, %v3116_v48  ;;  %v3604_v40 = vld [vmem:[#allocation52_spill] sm:$0xff] }
 0x273   : > { %v1478_v31 = vmul.f32 %v3596_v4, %v1162_v10  ;;  %v1442_v45 = vadd.f32 %v1438_v54, %v3118_v55  ;;  %v1488_v36 = vadd.f32 %v3597_v21, %v1202_v23  ;;  %v1511_v37 = vadd.f32 %v3598_v29, %v1242_v32 }
 0x274   : > { %v1534_v49 = vadd.f32 %v3599_v52, %v1282_v33  ;;  %v1557_v8 = vadd.f32 %v3600_v15, %v1322_v61  ;;  %v1580_v41 = vadd.f32 %v3601_v17, %v1362_v43  ;;  %v1603_v46 = vadd.f32 %v3602_v19, %v1402_v34 }
 0x275   : > { %v1482_v60 = vadd.f32 %v1478_v31, %v3120_v9  ;;  %vm1492_vm10 = vcmp.gt.f32.partialorder %v1488_v36, 0.0  ;;  %v1496_v48 = vmul.f32 0.01, %v1488_v36  ;;  %vm1515_vm11 = vcmp.gt.f32.partialorder %v1511_v37, 0.0 }
 0x276   : > { %v1519_v55 = vmul.f32 0.01, %v1511_v37  ;;  %vm1538_vm12 = vcmp.gt.f32.partialorder %v1534_v49, 0.0  ;;  %v1542_v28 = vmul.f32 0.01, %v1534_v49  ;;  %vm1561_vm13 = vcmp.gt.f32.partialorder %v1557_v8, 0.0 }
 0x277   : > { %v1565_v3 = vmul.f32 0.01, %v1557_v8  ;;  %v1500_v47 = vsel %vm1492_vm10, %v1488_v36, %v1496_v48  ;;  %vm1584_vm14 = vcmp.gt.f32.partialorder %v1580_v41, 0.0  ;;  %v1588_v12 = vmul.f32 0.01, %v1580_v41 }
 0x278   : > { %v1523_v9 = vsel %vm1515_vm11, %v1511_v37, %v1519_v55  ;;  %1505 = vst.msk [vmem:[%s3263_s5] sm:$0xff] %vm1504_vm15, %v1500_v47  ;;  %v1546_v10 = vsel %vm1538_vm12, %v1534_v49, %v1542_v28  ;;  %vm1607_vm0 = vcmp.gt.f32.partialorder %v1603_v46, 0.0  ;;  %v1611_v13 = vmul.f32 0.01, %v1603_v46 }
 0x279   : > { %1912 = vst.msk [vmem:[%s3263_s5 + $0x20] sm:$0xff] %vm1504_vm15, %v1523_v9  ;;  %v1569_v22 = vsel %vm1561_vm13, %v1557_v8, %v1565_v3  ;;  %1917 = vst.msk [vmem:[%s3263_s5 + $0x40] sm:$0xff] %vm1504_vm15, %v1546_v10  ;;  %v1592_v57 = vsel %vm1584_vm14, %v1580_v41, %v1588_v12  ;;  %v1626_v58 = vadd.f32 %v3603_v51, %v1442_v45  ;;  %v1161_v5 = vmul.f32 0.01, %v3234_v53 }
 0x27a   : > { %1922 = vst.msk [vmem:[%s3263_s5 + $0x60] sm:$0xff] %vm1504_vm15, %v1569_v22  ;;  %v1649_v62 = vadd.f32 %v3229_v30, %v1482_v60  ;;  %1927 = vst.msk [vmem:[%s3263_s5 + $0x80] sm:$0xff] %vm1504_vm15, %v1592_v57  ;;  %v1615_v59 = vsel %vm1607_vm0, %v1603_v46, %v1611_v13  ;;  %v1146_v23 = vadd.f32 %v3604_v40, %v3585_v35 }
 0x27b   : > { %1932 = vst.msk [vmem:[%s3263_s5 + $0xa0] sm:$0xff] %vm1504_vm15, %v1615_v59  ;;  %vm1630_vm1 = vcmp.gt.f32.partialorder %v1626_v58, 0.0  ;;  %v1634_v32 = vmul.f32 0.01, %v1626_v58  ;;  %v1165_v54 = vsel %vm1157_vm9, %v3234_v53, %v1161_v5 }
 0x27c   : > { %vm1653_vm2 = vcmp.gt.f32.partialorder %v1649_v62, 0.0  ;;  %v1657_v33 = vmul.f32 0.01, %v1649_v62  ;;  %vm1156_vm3 = vcmp.gt.f32.partialorder %v1146_v23, 0.0  ;;  %v1160_v61 = vmul.f32 0.01, %v1146_v23 }
 0x27d   : > { %v1638_v43 = vsel %vm1630_vm1, %v1626_v58, %v1634_v32  ;;  %v1201_v31 = vmul.f32 %v3589_v42, %v1165_v54  ;;  %v1241_v45 = vmul.f32 %v3590_v16, %v1165_v54  ;;  %v1281_v35 = vmul.f32 %v3591_v18, %v1165_v54 }
 0x27e   : > { %v1661_v34 = vsel %vm1653_vm2, %v1649_v62, %v1657_v33  ;;  %1937 = vst.msk [vmem:[%s3263_s5 + $0xc0] sm:$0xff] %vm1504_vm15, %v1638_v43  ;;  %v1321_v36 = vmul.f32 %v3592_v20, %v1165_v54  ;;  %v1361_v37 = vmul.f32 %v3593_v50, %v1165_v54  ;;  %v1401_v53 = vmul.f32 %v3594_v44, %v1165_v54 }
 0x27f   : > { %1942 = vst.msk [vmem:[%s3263_s5 + $0xe0] sm:$0xff] %vm1504_vm15, %v1661_v34  ;;  %v1205_v49 = vadd.f32 %v1201_v31, %v3179_v2  ;;  %v1245_v60 = vadd.f32 %v1241_v45, %v3181_v56  ;;  %v1441_v8 = vmul.f32 %v3595_v1, %v1165_v54  ;;  %v1481_v41 = vmul.f32 %v3596_v4, %v1165_v54 }
 0x280   : > { %v1285_v46 = vadd.f32 %v1281_v35, %v3183_v7  ;;  %v1325_v48 = vadd.f32 %v1321_v36, %v3185_v38  ;;  %v1365_v55 = vadd.f32 %v1361_v37, %v3187_v39  ;;  %v1405_v28 = vadd.f32 %v1401_v53, %v3189_v11 }
 0x281   : > { %v1445_v3 = vadd.f32 %v1441_v8, %v3191_v14  ;;  %v1485_v47 = vadd.f32 %v1481_v41, %v3193_v6  ;;  %v1491_v2 = vadd.f32 %v3597_v21, %v1205_v49  ;;  %v1514_v56 = vadd.f32 %v3598_v29, %v1245_v60  ;;  %v3606_v60 = vld [vmem:[#allocation42_spill] sm:$0xff]  ;;  %v3607_v41 = vld [vmem:[#allocation43_spill] sm:$0xff] }
 0x282   : > { %v1537_v9 = vadd.f32 %v3599_v52, %v1285_v46  ;;  %v1560_v12 = vadd.f32 %v3600_v15, %v1325_v48  ;;  %v1583_v7 = vadd.f32 %v3601_v17, %v1365_v55  ;;  %v1606_v38 = vadd.f32 %v3602_v19, %v1405_v28 }
 0x283   : > { %vm1495_vm4 = vcmp.gt.f32.partialorder %v1491_v2, 0.0  ;;  %v1499_v39 = vmul.f32 0.01, %v1491_v2  ;;  %vm1518_vm5 = vcmp.gt.f32.partialorder %v1514_v56, 0.0  ;;  %v1522_v11 = vmul.f32 0.01, %v1514_v56 }
 0x284   : > { %vm1541_vm6 = vcmp.gt.f32.partialorder %v1537_v9, 0.0  ;;  %v1545_v14 = vmul.f32 0.01, %v1537_v9  ;;  %vm1564_vm7 = vcmp.gt.f32.partialorder %v1560_v12, 0.0  ;;  %v1568_v6 = vmul.f32 0.01, %v1560_v12 }
 0x285   : > { %v1503_v10 = vsel %vm1495_vm4, %v1491_v2, %v1499_v39  ;;  %v1526_v22 = vsel %vm1518_vm5, %v1514_v56, %v1522_v11  ;;  %vm1587_vm8 = vcmp.gt.f32.partialorder %v1583_v7, 0.0  ;;  %v1591_v13 = vmul.f32 0.01, %v1583_v7 }
 0x286   : > { %1508 = vst.msk [vmem:[%s3263_s5 + $0x18] sm:$0xff] %vm1504_vm15, %v1503_v10  ;;  %1915 = vst.msk [vmem:[%s3263_s5 + $0x38] sm:$0xff] %vm1504_vm15, %v1526_v22  ;;  %v1549_v57 = vsel %vm1541_vm6, %v1537_v9, %v1545_v14  ;;  %v1572_v58 = vsel %vm1564_vm7, %v1560_v12, %v1568_v6  ;;  %vm1610_vm9 = vcmp.gt.f32.partialorder %v1606_v38, 0.0  ;;  %v1614_v62 = vmul.f32 0.01, %v1606_v38 }
 0x287   : > { %1920 = vst.msk [vmem:[%s3263_s5 + $0x58] sm:$0xff] %vm1504_vm15, %v1549_v57  ;;  %1925 = vst.msk [vmem:[%s3263_s5 + $0x78] sm:$0xff] %vm1504_vm15, %v1572_v58  ;;  %v1595_v5 = vsel %vm1587_vm8, %v1583_v7, %v1591_v13  ;;  %v1629_v59 = vadd.f32 %v3603_v51, %v1445_v3  ;;  %v1652_v40 = vadd.f32 %v3229_v30, %v1485_v47 }
 0x288   : > { %v1164_v32 = vsel %vm1156_vm3, %v1146_v23, %v1160_v61  ;;  %1930 = vst.msk [vmem:[%s3263_s5 + $0x98] sm:$0xff] %vm1504_vm15, %v1595_v5  ;;  %v1618_v33 = vsel %vm1610_vm9, %v1606_v38, %v1614_v62 }
 0x289   : > { %v1200_v54 = vmul.f32 %v3589_v42, %v1164_v32  ;;  %v1240_v43 = vmul.f32 %v3590_v16, %v1164_v32  ;;  %v1280_v34 = vmul.f32 %v3591_v18, %v1164_v32  ;;  %1935 = vst.msk [vmem:[%s3263_s5 + $0xb8] sm:$0xff] %vm1504_vm15, %v1618_v33  ;;  %vm1633_vm10 = vcmp.gt.f32.partialorder %v1629_v59, 0.0 }
 0x28a   : > { %v1637_v31 = vmul.f32 0.01, %v1629_v59  ;;  %vm1656_vm11 = vcmp.gt.f32.partialorder %v1652_v40, 0.0  ;;  %v1660_v45 = vmul.f32 0.01, %v1652_v40  ;;  %v1320_v42 = vmul.f32 %v3592_v20, %v1164_v32 }
 0x28b   : > { %v1204_v35 = vadd.f32 %v1200_v54, %v3210_v63  ;;  %v1244_v23 = vadd.f32 %v1240_v43, %v3212_v0  ;;  %v1284_v61 = vadd.f32 %v1280_v34, %v3214_v24  ;;  %v1360_v16 = vmul.f32 %v3593_v50, %v1164_v32 }
 0x28c   : > { %v1641_v36 = vsel %vm1633_vm10, %v1629_v59, %v1637_v31  ;;  %v1664_v37 = vsel %vm1656_vm11, %v1652_v40, %v1660_v45  ;;  %v1400_v18 = vmul.f32 %v3594_v44, %v1164_v32  ;;  %v1324_v53 = vadd.f32 %v1320_v42, %v3216_v25 }
 0x28d   : > { %1940 = vst.msk [vmem:[%s3263_s5 + $0xd8] sm:$0xff] %vm1504_vm15, %v1641_v36  ;;  %1945 = vst.msk [vmem:[%s3263_s5 + $0xf8] sm:$0xff] %vm1504_vm15, %v1664_v37  ;;  %v1440_v63 = vmul.f32 %v3595_v1, %v1164_v32  ;;  %v1480_v0 = vmul.f32 %v3596_v4, %v1164_v32  ;;  %v1490_v24 = vadd.f32 %v3597_v21, %v1204_v35 }
 0x28e   : > { %v1364_v20 = vadd.f32 %v1360_v16, %v3218_v26  ;;  %v1404_v49 = vadd.f32 %v1400_v18, %v3220_v27  ;;  %v1513_v50 = vadd.f32 %v3598_v29, %v1244_v23  ;;  %v1536_v44 = vadd.f32 %v3599_v52, %v1284_v61 }
 0x28f   : > { %v1444_v8 = vadd.f32 %v1440_v63, %v3606_v60  ;;  %v1484_v25 = vadd.f32 %v1480_v0, %v3607_v41  ;;  %vm1494_vm12 = vcmp.gt.f32.partialorder %v1490_v24, 0.0  ;;  %v1498_v1 = vmul.f32 0.01, %v1490_v24 }
 0x290   : > { %vm1517_vm13 = vcmp.gt.f32.partialorder %v1513_v50, 0.0  ;;  %v1521_v4 = vmul.f32 0.01, %v1513_v50  ;;  %vm1540_vm14 = vcmp.gt.f32.partialorder %v1536_v44, 0.0  ;;  %v1544_v26 = vmul.f32 0.01, %v1536_v44 }
 0x291   : > { %v1502_v21 = vsel %vm1494_vm12, %v1490_v24, %v1498_v1  ;;  %v1559_v27 = vadd.f32 %v3600_v15, %v1324_v53  ;;  %v1582_v29 = vadd.f32 %v3601_v17, %v1364_v20  ;;  %v1605_v52 = vadd.f32 %v3602_v19, %v1404_v49 }
 0x292   : > { %1507 = vst.msk [vmem:[%s3263_s5 + $0x10] sm:$0xff] %vm1504_vm15, %v1502_v21  ;;  %v1525_v46 = vsel %vm1517_vm13, %v1513_v50, %v1521_v4  ;;  %v1548_v48 = vsel %vm1540_vm14, %v1536_v44, %v1544_v26  ;;  %v1628_v55 = vadd.f32 %v3603_v51, %v1444_v8  ;;  %v1651_v28 = vadd.f32 %v3229_v30, %v1484_v25 }
 0x293   : > { %1914 = vst.msk [vmem:[%s3263_s5 + $0x30] sm:$0xff] %vm1504_vm15, %v1525_v46  ;;  %1919 = vst.msk [vmem:[%s3263_s5 + $0x50] sm:$0xff] %vm1504_vm15, %v1548_v48  ;;  %vm1563_vm0 = vcmp.gt.f32.partialorder %v1559_v27, 0.0  ;;  %v1567_v15 = vmul.f32 0.01, %v1559_v27  ;;  %vm1586_vm1 = vcmp.gt.f32.partialorder %v1582_v29, 0.0 }
 0x294   : > { %v1590_v17 = vmul.f32 0.01, %v1582_v29  ;;  %vm1609_vm2 = vcmp.gt.f32.partialorder %v1605_v52, 0.0  ;;  %v1613_v19 = vmul.f32 0.01, %v1605_v52  ;;  %vm1632_vm3 = vcmp.gt.f32.partialorder %v1628_v55, 0.0 }
 0x295   : > { %v1636_v51 = vmul.f32 0.01, %v1628_v55  ;;  %v1571_v30 = vsel %vm1563_vm0, %v1559_v27, %v1567_v15  ;;  %vm1655_vm4 = vcmp.gt.f32.partialorder %v1651_v28, 0.0  ;;  %v1659_v47 = vmul.f32 0.01, %v1651_v28 }
 0x296   : > { %v1594_v3 = vsel %vm1586_vm1, %v1582_v29, %v1590_v17  ;;  %1924 = vst.msk [vmem:[%s3263_s5 + $0x70] sm:$0xff] %vm1504_vm15, %v1571_v30  ;;  %v1617_v2 = vsel %vm1609_vm2, %v1605_v52, %v1613_v19 }
 0x297   : > { %1929 = vst.msk [vmem:[%s3263_s5 + $0x90] sm:$0xff] %vm1504_vm15, %v1594_v3  ;;  %v1640_v56 = vsel %vm1632_vm3, %v1628_v55, %v1636_v51  ;;  %1934 = vst.msk [vmem:[%s3263_s5 + $0xb0] sm:$0xff] %vm1504_vm15, %v1617_v2  ;;  %v1663_v9 = vsel %vm1655_vm4, %v1651_v28, %v1659_v47 }
 0x298   : > { %1939 = vst.msk [vmem:[%s3263_s5 + $0xd0] sm:$0xff] %vm1504_vm15, %v1640_v56  ;;  %1944 = vst.msk [vmem:[%s3263_s5 + $0xf0] sm:$0xff] %vm1504_vm15, %v1663_v9 }
 0x299   : > { %2351 = shalt.err (!%p2348_p7)
}
 0x29a   : > { %s2352_s12 = scalar_lea.hbm %s3407_s7, 4096  ;;  %s2356_s13 = scalar_lea.hbm %s3610_s29, 8192 }
 0x29b   : > { %p2353_p9 = scmp.ne.s32.totalorder %s3407_s7, %s2352_s12  ;;  %p2357_p4 = scmp.lt.u32.totalorder %s3407_s7, %s3610_s29 }
 0x29c   : > { %p2358_p10 = scmp.lt.u32.totalorder %s2356_s13, %s2352_s12  ;;  %p2360_p13 = scmp.lt.u32.totalorder %s2352_s12, %s3407_s7 }
 0x29d   : > { %p2354_p8 = pnand %p2353_p9, %p3611_p1 }
 0x29e   : > { %p2359_p11 = por %p2358_p10, %p2357_p4 }
 0x29f   : > { %p2355_p12 = pneg %p2354_p8 }
 0x2a0   : > { %p2361_p0 = por %p2360_p13, %p2359_p11 }
 0x2a2   : > { %p2362_p2 = pnand %p2361_p0, %p2355_p12 }
 0x2a4   : > { %2365 = shalt.err (!%p2362_p2)
}
 0x2a5   : > { %s2430_s15 = smov 128   ;;  %s2431_s17 = smov 8  }
 0x2a6   : > { %2217 = dma.vmem_to_hbm [thread:$0]  (%p3611_p1), %s3409_s22, 4096, %s3407_s7, %s3423_s9, %s2430_s15, %s2430_s15, %s2431_s17  }
 0x2a7 PF: > { %s3612_s18 = sld [smem:[#allocation17_spill]]  ;;  %s3613_s11 = sld [smem:[#allocation12_spill]] }
 0x2a8   : > { %s3614_s19 = sld [smem:[#allocation20_spill]] }
 0x2ad   : > { %p2239_p3 = scmp.ge.s32.totalorder %s3612_s18, 2  ;;  %s1699_s0 = sand.u32 1, %s3613_s11  }
 0x2ae   : > { %p3615_p5 = scmp.ne.s32.totalorder %s3614_s19, 0  ;;  %s1700_s1 = scalar_lea.sflag [#allocation3], %s1699_s0 }
 0x2b0   : > { %p2230_p6 = pnand %p2239_p3, %p3615_p5 }
 0x2b2   : > { %2399 = dma.done.wait (!%p2230_p6), %s1700_s1, 4096  }
 0x2b3   : > { %2401 = vsyncadd (!%p2230_p6), %s1700_s1, 4294963200  ;;  %s21_s26 = sadd.s32 1, %s3612_s18   ;;  %s3616_s21 = sld [smem:[#allocation13_spill]] }
 0x2b4   : > { %p18_p7 = scmp.ge.s32.totalorder %s21_s26, 4   ;;  %s3617_s22 = sld [smem:[#allocation14_spill]] }
 0x2b5   : > { %s3618_s23 = sld [smem:[#allocation21_spill]]  ;;  %s3619_s24 = sld [smem:[#allocation16_spill]] }
 0x2b6   : > { %s3620_s25 = sld [smem:[#allocation18_spill]]  ;;  %20 = sbr.rel (!%p18_p7) target bundleno = 14 (0xe), region = 107 }
 0x2bd   :  { %1705 = vsyncpa [#allocation3], 1 }
 0x2be   :  { %1707 = vsyncpa [#allocation3 + $0x1], 1 }
 0x2bf   :  { %1708 = vsyncpa [#allocation4], 1 }
 0x2c0   :  { %1710 = vsyncpa [#allocation4 + $0x1], 1 }
 0x2c1   :  { %1711 = vsyncpa [#allocation6], 1 }

</bundles_post_ra>
